<compile_context>
chip_gen: v7x
topology: tpu7x:2x2x1
jax: 0.10.0
libtpu: 0.0.40
codegen_flags: <defaults>
</compile_context>

<pallas_src>
import functools

import jax
import jax.numpy as jnp
from jax import lax
from jax.experimental import pallas as pl
from jax.experimental.pallas import tpu as pltpu


# ----------------------------------------------------------------------------
# helpers
# ----------------------------------------------------------------------------
def _round_up(x, m):
    return ((x + m - 1) // m) * m


def _pick_tile(n, target, align, min_blocks=1):
    """Tile size (multiple of `align`) <= target with small padding.  If
    min_blocks > 1, cap the tile so the padded extent holds >= min_blocks tiles
    whenever alignment allows (keeps both v7x TensorCores busy)."""
    na = _round_up(n, align)
    t = min(na, _round_up(target, align))
    if min_blocks > 1:
        cap = max(align, _round_up(-(-na // min_blocks), align))
        t = min(t, cap)
    chunks = max(1, -(-na // t))
    return _round_up(-(-na // chunks), align)


def _pad_rows(x, rows):
    if x.shape[0] == rows:
        return x
    return jnp.pad(x, ((0, rows - x.shape[0]), (0, 0)))


def _gcn_tiles(n):
    tm = _pick_tile(n, 1024, 128, min_blocks=2)
    tk = _pick_tile(n, 4096, 128)
    return tm, tk


def prepare_graph(graph):
    """Pad the normalized adjacency to the GCN tiling and cast to bf16.
    Call ONCE outside the jitted forward and cache the result."""
    n = graph.shape[0]
    tm, tk = _gcn_tiles(n)
    mp, kp = _round_up(n, tm), _round_up(n, tk)
    return jnp.pad(graph, ((0, mp - n), (0, kp - n))).astype(jnp.bfloat16)


# ----------------------------------------------------------------------------
# Kernel 1: GCN propagation  out = Graph @ emb  (bf16 operands, f32 accumulate)
#           fused second output: new_sum = run_sum + out  (layer-mean fusion)
# ----------------------------------------------------------------------------
def gcn_kernel(a_ref, b_ref, s_ref, o_ref, so_ref, acc_ref):
    @pl.when(pl.program_id(1) == 0)
    def _():
        acc_ref[...] = jnp.zeros(acc_ref.shape, acc_ref.dtype)

    acc_ref[...] += jnp.dot(a_ref[...], b_ref[...],
                            preferred_element_type=jnp.float32)

    @pl.when(pl.program_id(1) == pl.num_programs(1) - 1)
    def _():
        o_ref[...] = acc_ref[...]
        so_ref[...] = s_ref[...] + acc_ref[...]


def gcn_propagate_accum(graph_p_bf16, emb, run_sum, n_rows, tm, tk):
    """graph_p_bf16: (Mp, Kp) bf16 padded normalized adjacency (prepared once).
    Returns (new_emb[:n_rows], new_running_sum[:n_rows]) in f32."""
    Mp, Kp = graph_p_bf16.shape
    D = emb.shape[1]
    embp = _pad_rows(emb, Kp).astype(jnp.bfloat16)   # bf16 once per layer, outside kernel
    sump = _pad_rows(run_sum, Mp)

    out, outsum = pl.pallas_call(
        gcn_kernel,
        out_shape=(jax.ShapeDtypeStruct((Mp, D), jnp.float32),
                   jax.ShapeDtypeStruct((Mp, D), jnp.float32)),
        grid_spec=pltpu.PrefetchScalarGridSpec(
            num_scalar_prefetch=0,
            grid=(Mp // tm, Kp // tk),
            in_specs=[
                # NOTE: could add pipeline_mode=pl.Buffered(3) on the graph spec
                # on v7x for deeper prefetch; kept at default double-buffering.
                pl.BlockSpec((tm, tk), lambda i, k: (i, k)),   # graph tile (bf16)
                pl.BlockSpec((tk, D), lambda i, k: (k, 0)),    # emb tile (bf16)
                pl.BlockSpec((tm, D), lambda i, k: (i, 0)),    # running-sum tile (f32)
            ],
            out_specs=(pl.BlockSpec((tm, D), lambda i, k: (i, 0)),
                       pl.BlockSpec((tm, D), lambda i, k: (i, 0))),
            scratch_shapes=[pltpu.VMEM((tm, D), jnp.float32)],
        ),
        compiler_params=pltpu.CompilerParams(
            dimension_semantics=("parallel", "arbitrary"),
            vmem_limit_bytes=40 * 1024 * 1024),
    )(graph_p_bf16, embp, sump)
    return out[:n_rows], outsum[:n_rows]


# ----------------------------------------------------------------------------
# Kernel 2: row-wise L2 normalization (hoisted pool normalization, bf16 out)
# ----------------------------------------------------------------------------
def l2norm_kernel(x_ref, o_ref):
    x = x_ref[...].astype(jnp.float32)
    inv = lax.rsqrt(jnp.maximum(jnp.sum(x * x, axis=-1, keepdims=True), 1e-24))
    o_ref[...] = (x * inv).astype(o_ref.dtype)   # F.normalize(eps=1e-12) semantics


def l2_normalize_bf16(x, tr_target=1024):
    N, D = x.shape
    tr = _pick_tile(N, tr_target, 8)
    Np = _round_up(N, tr)
    xp = _pad_rows(x, Np)
    out = pl.pallas_call(
        l2norm_kernel,
        out_shape=jax.ShapeDtypeStruct((Np, D), jnp.bfloat16),
        grid_spec=pltpu.PrefetchScalarGridSpec(
            num_scalar_prefetch=0,
            grid=(Np // tr,),
            in_specs=[pl.BlockSpec((tr, D), lambda i: (i, 0))],
            out_specs=pl.BlockSpec((tr, D), lambda i: (i, 0)),
        ),
        compiler_params=pltpu.CompilerParams(dimension_semantics=("parallel",)),
    )(xp)
    return out[:N]


# ----------------------------------------------------------------------------
# Kernel 3: InfoNCE SSL loss, negatives pool tiled over a grid axis with an
#           online max / running denominator (flash-softmax style).
#   cur    : (B, D)  query embeddings (normalized in-kernel, f32)
#   pre_n  : (B, D)  positives, ALREADY row-normalized (bf16, gathered from pool)
#   pool_n : (N, D)  ALREADY row-normalized negatives pool (bf16)
# Matches: pos = sum(cur_n*pre_n)/T ; ttl = sum_j exp(cur_n.pool_j/T)
#          per-row loss = -log(exp(pos)/ttl + 1e-7)
# ----------------------------------------------------------------------------
def infonce_kernel(cur_ref, pre_ref, pool_ref, out_ref,
                   curn_sc, pos_sc, m_sc, l_sc, *, inv_t, n_valid, mask_cols):
    n_idx = pl.program_id(1)
    tn = pool_ref.shape[0]

    @pl.when(n_idx == 0)
    def _():
        cur = cur_ref[...].astype(jnp.float32)
        inv = lax.rsqrt(jnp.maximum(jnp.sum(cur * cur, axis=-1, keepdims=True), 1e-24))
        scaled = cur * inv * inv_t                          # fold 1/T once
        curn_sc[...] = scaled.astype(jnp.bfloat16)          # bf16 MXU operand
        pos_sc[...] = jnp.sum(scaled * pre_ref[...].astype(jnp.float32),
                              axis=-1, keepdims=True)       # = pos/T (f32)
        m_sc[...] = jnp.full(m_sc.shape, -jnp.inf, m_sc.dtype)
        l_sc[...] = jnp.zeros(l_sc.shape, l_sc.dtype)

    # (tb, tn) logits (already divided by T via the folded scale), f32 accumulate.
    logits = lax.dot_general(curn_sc[...], pool_ref[...],
                             dimension_numbers=(((1,), (1,)), ((), ())),
                             preferred_element_type=jnp.float32)
    if mask_cols:   # static flag: only emitted when the pool is padded
        col = lax.broadcasted_iota(jnp.int32, logits.shape, 1) + n_idx * tn
        logits = jnp.where(col < n_valid, logits, -jnp.inf)

    # TODO(synk): on v6e/v7x a bf16 exp path (f32 m/l accumulation) could relieve
    # the EUP if it turns out to be the binding slot at D=32.
    m_new = jnp.maximum(m_sc[...], jnp.max(logits, axis=-1, keepdims=True))
    corr = jnp.exp(m_sc[...] - m_new)
    l_sc[...] = corr * l_sc[...] + jnp.sum(jnp.exp(logits - m_new),
                                           axis=-1, keepdims=True)
    m_sc[...] = m_new

    @pl.when(n_idx == pl.num_programs(1) - 1)
    def _():
        ratio = jnp.exp(pos_sc[...] - m_sc[...]) / l_sc[...]
        out_ref[...] = -jnp.log(ratio + 1e-7)


def infonce_rows(cur, pre_n, pool_n, temperature, tb_target=256, tn_target=4096):
    """Per-row InfoNCE losses (length B).  Padded batch rows are dropped by
    slicing in JAX (no in-kernel row masking needed)."""
    B, D = cur.shape
    N = pool_n.shape[0]
    tb = _pick_tile(B, tb_target, 8, min_blocks=2)
    Bp = _round_up(B, tb)
    tn = _pick_tile(N, tn_target, 8)
    Np = _round_up(N, tn)

    cur_p = _pad_rows(cur.astype(jnp.float32), Bp)
    pre_p = _pad_rows(pre_n, Bp).astype(jnp.bfloat16)
    pool_p = _pad_rows(pool_n, Np).astype(jnp.bfloat16)

    kernel = functools.partial(infonce_kernel, inv_t=1.0 / float(temperature),
                               n_valid=N, mask_cols=(Np != N))
    out = pl.pallas_call(
        kernel,
        out_shape=jax.ShapeDtypeStruct((Bp, 1), jnp.float32),
        grid_spec=pltpu.PrefetchScalarGridSpec(
            num_scalar_prefetch=0,
            grid=(Bp // tb, Np // tn),
            in_specs=[
                pl.BlockSpec((tb, D), lambda b, n: (b, 0)),   # cur (f32)
                pl.BlockSpec((tb, D), lambda b, n: (b, 0)),   # pre (bf16, normalized)
                pl.BlockSpec((tn, D), lambda b, n: (n, 0)),   # pool (bf16, normalized)
            ],
            out_specs=pl.BlockSpec((tb, 1), lambda b, n: (b, 0)),
            scratch_shapes=[pltpu.VMEM((tb, D), jnp.bfloat16),  # cur_n / T (bf16)
                            pltpu.VMEM((tb, 1), jnp.float32),   # pos / T
                            pltpu.VMEM((tb, 1), jnp.float32),   # running max
                            pltpu.VMEM((tb, 1), jnp.float32)],  # running denom
        ),
        compiler_params=pltpu.CompilerParams(
            dimension_semantics=("parallel", "arbitrary"),
            vmem_limit_bytes=32 * 1024 * 1024),
    )(cur_p, pre_p, pool_p)
    return out[:B, 0]


def infonce_pair_sums(cur_a, cur_b, pre_n, pool_n, temperature):
    """Two query batches sharing positives + negatives pool: concatenate so the
    pool is streamed from HBM once; return (sum_a, sum_b)."""
    B = cur_a.shape[0]
    rows = infonce_rows(jnp.concatenate([cur_a, cur_b], axis=0),
                        jnp.concatenate([pre_n, pre_n], axis=0),
                        pool_n, temperature)
    return jnp.sum(rows[:B]), jnp.sum(rows[B:])


# ----------------------------------------------------------------------------
# Kernel 4: BPR loss (aggregated embeddings) + L2 reg loss (ego embeddings)
# (negligible cost; full arrays in VMEM)
# ----------------------------------------------------------------------------
def bpr_reg_kernel(u_ref, p_ref, n_ref, eu_ref, ep_ref, en_ref,
                   bpr_ref, reg_ref):
    u = u_ref[...].astype(jnp.float32)
    p = p_ref[...].astype(jnp.float32)
    n = n_ref[...].astype(jnp.float32)
    pos = jnp.sum(u * p, axis=-1, keepdims=True)
    neg = jnp.sum(u * n, axis=-1, keepdims=True)
    x = neg - pos
    softplus = jnp.maximum(x, 0.0) + jnp.log1p(jnp.exp(-jnp.abs(x)))
    bpr_ref[0, 0] = jnp.mean(softplus)

    batch = u_ref.shape[0]
    reg = (jnp.sum(eu_ref[...].astype(jnp.float32) ** 2)
           + jnp.sum(ep_ref[...].astype(jnp.float32) ** 2)
           + jnp.sum(en_ref[...].astype(jnp.float32) ** 2))
    reg_ref[0, 0] = 0.5 * reg / batch


def bpr_and_reg(u, p, n, eu, ep, en):
    outs = pl.pallas_call(
        bpr_reg_kernel,
        out_shape=(jax.ShapeDtypeStruct((1, 1), jnp.float32),
                   jax.ShapeDtypeStruct((1, 1), jnp.float32)),
        in_specs=[pl.BlockSpec(memory_space=pltpu.MemorySpace.VMEM)] * 6,
        out_specs=(pl.BlockSpec(memory_space=pltpu.MemorySpace.SMEM),
                   pl.BlockSpec(memory_space=pltpu.MemorySpace.SMEM)),
    )(u, p, n, eu, ep, en)
    return outs[0][0, 0], outs[1][0, 0]


# ----------------------------------------------------------------------------
# CGCL forward (glue in plain JAX: concat, gather, split)
# ----------------------------------------------------------------------------
def cgcl_forward(user_emb_w, item_emb_w, graph_p, user, positive, negative, cfg):
    num_users = user_emb_w.shape[0]

    # ----- aggregate() with fused per-layer running sum -----
    e0 = jnp.concatenate([user_emb_w, item_emb_w], axis=0).astype(jnp.float32)
    N, D = e0.shape
    tm, tk = _gcn_tiles(N)
    assert graph_p.shape == (_round_up(N, tm), _round_up(N, tk)), \
        "graph_p must come from prepare_graph()"

    embeddings = [e0]
    x = e0
    run_sum = e0
    for _ in range(int(cfg["GCN_layer"])):
        x, run_sum = gcn_propagate_accum(graph_p, x, run_sum, N, tm, tk)
        embeddings.append(x)
    final = run_sum / float(cfg["GCN_layer"] + 1)
    users_emb, items_emb = final[:num_users], final[num_users:]

    # ----- gathers (glue) -----
    u_e = users_emb[user]
    p_e = items_emb[positive]
    n_e = items_emb[negative]
    ego_u = user_emb_w[user]
    ego_p = item_emb_w[positive]
    ego_n = item_emb_w[negative]

    bpr_loss, reg = bpr_and_reg(u_e, p_e, n_e, ego_u, ego_p, ego_n)
    reg_loss = cfg["reg_lambda"] * reg

    # ----- SSL losses -----
    e_center, e_candidate, e_context = embeddings[0], embeddings[1], embeddings[2]
    T = cfg["temperature"]

    # Pool normalization hoisted: one launch per embedding tensor, bf16 output.
    center_n = l2_normalize_bf16(e_center)
    cand_n = l2_normalize_bf16(e_candidate)
    center_u_n, center_i_n = center_n[:num_users], center_n[num_users:]
    cand_u_n, cand_i_n = cand_n[:num_users], cand_n[num_users:]

    ctx_u, ctx_i = e_context[:num_users], e_context[num_users:]
    cnd_u, cnd_i = e_candidate[:num_users], e_candidate[num_users:]

    # layer-SSL and candidate-SSL share the center pools -> fuse their query
    # batches so each center pool is streamed once.
    ul_layer, ul_cand = infonce_pair_sums(
        ctx_i[positive], cnd_i[positive], center_u_n[user], center_u_n, T)
    il_layer, il_cand = infonce_pair_sums(
        ctx_u[user], cnd_u[user], center_i_n[positive], center_i_n, T)

    # struct-SSL contrasts context against the candidate pools.
    ul_struct = jnp.sum(infonce_rows(ctx_i[positive], cand_u_n[user], cand_u_n, T))
    il_struct = jnp.sum(infonce_rows(ctx_u[user], cand_i_n[positive], cand_i_n, T))

    a, b, g = cfg["alpha"], cfg["beta"], cfg["gamma"]
    layer_ssl_loss = cfg["ssl_lambda_alpha"] * (a * ul_layer + (1.0 - a) * il_layer)
    candidate_ssl_loss = cfg["ssl_lambda_beta"] * (b * ul_cand + (1.0 - b) * il_cand)
    struct_ssl_loss = cfg["ssl_lambda_gamma"] * (g * ul_struct + (1.0 - g) * il_struct)

    return [bpr_loss, reg_loss, layer_ssl_loss, candidate_ssl_loss, struct_ssl_loss]


# ----------------------------------------------------------------------------
# Deterministic setup + run
# ----------------------------------------------------------------------------
def xavier_uniform(key, shape):
    fan_out, fan_in = shape
    bound = jnp.sqrt(6.0 / (fan_in + fan_out))
    return jax.random.uniform(key, shape, jnp.float32, -bound, bound)


def build_graph(key, num_users, num_items):
    # synthetic bipartite interactions -> symmetric normalized adjacency
    R = (jax.random.uniform(key, (num_users, num_items)) < 0.15).astype(jnp.float32)
    N = num_users + num_items
    A = jnp.zeros((N, N), jnp.float32)
    A = A.at[:num_users, num_users:].set(R)
    A = A.at[num_users:, :num_users].set(R.T)
    deg = A.sum(axis=1)
    d_inv = jnp.where(deg > 0, 1.0 / jnp.sqrt(deg), 0.0)
    return d_inv[:, None] * A * d_inv[None, :]


if __name__ == "__main__":
    cfg = dict(
        reg_lambda=1e-4, ssl_lambda_alpha=0.1, ssl_lambda_beta=0.1,
        ssl_lambda_gamma=0.1, alpha=0.5, beta=0.5, gamma=0.5,
        temperature=0.2, embedding_size=32, GCN_layer=2,
    )
    num_users, num_items, batch = 48, 80, 8

    key = jax.random.PRNGKey(0)
    k_u, k_i, k_g, k_usr, k_pos, k_neg = jax.random.split(key, 6)

    user_emb_w = xavier_uniform(k_u, (num_users, cfg["embedding_size"]))
    item_emb_w = xavier_uniform(k_i, (num_items, cfg["embedding_size"]))
    graph = build_graph(k_g, num_users, num_items)
    # pad + bf16 cast done ONCE, outside the jitted forward (cached across steps)
    graph_p = prepare_graph(graph)

    user = jax.random.randint(k_usr, (batch,), 0, num_users, jnp.int32)
    positive = jax.random.randint(k_pos, (batch,), 0, num_items, jnp.int32)
    negative = jax.random.randint(k_neg, (batch,), 0, num_items, jnp.int32)

    fwd = jax.jit(functools.partial(cgcl_forward, cfg=cfg))
    losses = fwd(user_emb_w, item_emb_w, graph_p, user, positive, negative)
    losses = [jax.block_until_ready(l) for l in losses]

    names = ["bpr_loss", "reg_loss", "layer_ssl_loss",
             "candidate_ssl_loss", "struct_ssl_loss"]
    for nm, l in zip(names, losses):
        assert jnp.isfinite(l), f"{nm} is not finite"
    print("KERNEL_OK")
</pallas_src>

<mosaic_0001>
module attributes {stable_mosaic.version = 11 : i64} {
  func.func @l2norm_kernel(%arg0: i32, %arg1: memref<128x32xf32, #tpu.memory_space<vmem>>, %arg2: memref<128x32xbf16, #tpu.memory_space<vmem>>) attributes {dimension_semantics = [#tpu.dimension_semantics<parallel>], iteration_bounds = array<i64: 1>, scalar_prefetch = 0 : i64, scratch_operands = 0 : i64, tpu.core_type = #tpu.core_type<tc>, window_params = [{transform_indices = @transform_0, window_bounds = array<i64: 128, 32>}, {transform_indices = @transform_1, window_bounds = array<i64: 128, 32>}]} {
    %c0 = arith.constant 0 : index
    %c0_0 = arith.constant 0 : index
    %0 = vector.load %arg1[%c0, %c0_0] : memref<128x32xf32, #tpu.memory_space<vmem>>, vector<128x32xf32>
    %1 = arith.mulf %0, %0 : vector<128x32xf32>
    %cst = arith.constant dense<0.000000e+00> : vector<128xf32>
    %2 = vector.multi_reduction <add>, %1, %cst [1] : vector<128x32xf32> to vector<128xf32>
    %3 = vector.shape_cast %2 : vector<128xf32> to vector<128x1xf32>
    %cst_1 = arith.constant 1.000000e-24 : f32
    %4 = vector.broadcast %cst_1 : f32 to vector<128x1xf32>
    %5 = arith.maximumf %3, %4 : vector<128x1xf32>
    %6 = math.rsqrt %5 : vector<128x1xf32>
    %7 = vector.broadcast %6 : vector<128x1xf32> to vector<128x32xf32>
    %8 = arith.mulf %0, %7 : vector<128x32xf32>
    %9 = arith.truncf %8 : vector<128x32xf32> to vector<128x32xbf16>
    %c0_2 = arith.constant 0 : index
    %c0_3 = arith.constant 0 : index
    %10 = vector.load %arg2[%c0_2, %c0_3] : memref<128x32xbf16, #tpu.memory_space<vmem>>, vector<128x32xbf16>
    tpu.vector_store %arg2[%c0_2, %c0_3], %9 {strides = array<i32>} : memref<128x32xbf16, #tpu.memory_space<vmem>>, vector<128x32xbf16>,
    return
  }
  func.func @transform_0(%arg0: i32) -> (i32, i32) {
    %c0_i32 = arith.constant 0 : i32
    %c0_i32_0 = arith.constant 0 : i32
    return %arg0, %c0_i32 : i32, i32
  }
  func.func @transform_1(%arg0: i32) -> (i32, i32) {
    %c0_i32 = arith.constant 0 : i32
    %c0_i32_0 = arith.constant 0 : i32
    return %arg0, %c0_i32 : i32, i32
  }
}

module attributes {stable_mosaic.version = 11 : i64} {
  func.func @gcn_kernel(%arg0: i32, %arg1: i32, %arg2: memref<128x128xbf16, #tpu.memory_space<vmem>>, %arg3: memref<128x32xbf16, #tpu.memory_space<vmem>>, %arg4: memref<128x32xf32, #tpu.memory_space<vmem>>, %arg5: memref<128x32xf32, #tpu.memory_space<vmem>>, %arg6: memref<128x32xf32, #tpu.memory_space<vmem>>, %arg7: memref<128x32xf32, #tpu.memory_space<vmem>>) attributes {dimension_semantics = [#tpu.dimension_semantics<parallel>, #tpu.dimension_semantics<arbitrary>], iteration_bounds = array<i64: 1, 1>, scalar_prefetch = 0 : i64, scratch_operands = 1 : i64, tpu.core_type = #tpu.core_type<tc>, window_params = [{transform_indices = @transform_0, window_bounds = array<i64: 128, 128>}, {transform_indices = @transform_1, window_bounds = array<i64: 128, 32>}, {transform_indices = @transform_2, window_bounds = array<i64: 128, 32>}, {transform_indices = @transform_3, window_bounds = array<i64: 128, 32>}, {transform_indices = @transform_4, window_bounds = array<i64: 128, 32>}]} {
    %c0_i32 = arith.constant 0 : i32
    %0 = arith.cmpi eq, %arg1, %c0_i32 : i32
    %1 = arith.extui %0 : i1 to i32
    %c0_i32_0 = arith.constant 0 : i32
    %2 = arith.cmpi ne, %1, %c0_i32_0 : i32
    scf.if %2 {
      %cst_10 = arith.constant 0.000000e+00 : f32
      %12 = vector.broadcast %cst_10 : f32 to vector<128x32xf32>
      %c0_11 = arith.constant 0 : index
      %c0_12 = arith.constant 0 : index
      %13 = vector.load %arg7[%c0_11, %c0_12] : memref<128x32xf32, #tpu.memory_space<vmem>>, vector<128x32xf32>
      tpu.vector_store %arg7[%c0_11, %c0_12], %12 {strides = array<i32>} : memref<128x32xf32, #tpu.memory_space<vmem>>, vector<128x32xf32>,
    } else {
    }
    %c0 = arith.constant 0 : index
    %c0_1 = arith.constant 0 : index
    %3 = vector.load %arg7[%c0, %c0_1] : memref<128x32xf32, #tpu.memory_space<vmem>>, vector<128x32xf32>
    %c0_2 = arith.constant 0 : index
    %c0_3 = arith.constant 0 : index
    %4 = vector.load %arg2[%c0_2, %c0_3] : memref<128x128xbf16, #tpu.memory_space<vmem>>, vector<128x128xbf16>
    %c0_4 = arith.constant 0 : index
    %c0_5 = arith.constant 0 : index
    %5 = vector.load %arg3[%c0_4, %c0_5] : memref<128x32xbf16, #tpu.memory_space<vmem>>, vector<128x32xbf16>
    %cst = arith.constant dense<0.000000e+00> : vector<128x32xf32>
    %6 = tpu.matmul %4, %5, %cst {dimension_numbers = #tpu.dot_dimension_numbers<[1], [0], [0], [1], [0, 0, 1, 1], [], []>} : vector<128x128xbf16>, vector<128x32xbf16>, vector<128x32xf32> -> vector<128x32xf32>
    %7 = arith.addf %3, %6 : vector<128x32xf32>
    %c0_6 = arith.constant 0 : index
    %c0_7 = arith.constant 0 : index
    %8 = vector.load %arg7[%c0_6, %c0_7] : memref<128x32xf32, #tpu.memory_space<vmem>>, vector<128x32xf32>
    tpu.vector_store %arg7[%c0_6, %c0_7], %7 {strides = array<i32>} : memref<128x32xf32, #tpu.memory_space<vmem>>, vector<128x32xf32>,
    %c0_i32_8 = arith.constant 0 : i32
    %9 = arith.cmpi eq, %arg1, %c0_i32_8 : i32
    %10 = arith.extui %9 : i1 to i32
    %c0_i32_9 = arith.constant 0 : i32
    %11 = arith.cmpi ne, %10, %c0_i32_9 : i32
    scf.if %11 {
      %c0_10 = arith.constant 0 : index
      %c0_11 = arith.constant 0 : index
      %12 = vector.load %arg7[%c0_10, %c0_11] : memref<128x32xf32, #tpu.memory_space<vmem>>, vector<128x32xf32>
      %c0_12 = arith.constant 0 : index
      %c0_13 = arith.constant 0 : index
      %13 = vector.load %arg5[%c0_12, %c0_13] : memref<128x32xf32, #tpu.memory_space<vmem>>, vector<128x32xf32>
      tpu.vector_store %arg5[%c0_12, %c0_13], %12 {strides = array<i32>} : memref<128x32xf32, #tpu.memory_space<vmem>>, vector<128x32xf32>,
      %c0_14 = arith.constant 0 : index
      %c0_15 = arith.constant 0 : index
      %14 = vector.load %arg4[%c0_14, %c0_15] : memref<128x32xf32, #tpu.memory_space<vmem>>, vector<128x32xf32>
      %c0_16 = arith.constant 0 : index
      %c0_17 = arith.constant 0 : index
      %15 = vector.load %arg7[%c0_16, %c0_17] : memref<128x32xf32, #tpu.memory_space<vmem>>, vector<128x32xf32>
      %16 = arith.addf %14, %15 : vector<128x32xf32>
      %c0_18 = arith.constant 0 : index
      %c0_19 = arith.constant 0 : index
      %17 = vector.load %arg6[%c0_18, %c0_19] : memref<128x32xf32, #tpu.memory_space<vmem>>, vector<128x32xf32>
      tpu.vector_store %arg6[%c0_18, %c0_19], %16 {strides = array<i32>} : memref<128x32xf32, #tpu.memory_space<vmem>>, vector<128x32xf32>,
    } else {
    }
    return
  }
  func.func @transform_0(%arg0: i32, %arg1: i32) -> (i32, i32) {
    %c0_i32 = arith.constant 0 : i32
    return %arg0, %arg1 : i32, i32
  }
  func.func @transform_1(%arg0: i32, %arg1: i32) -> (i32, i32) {
    %c0_i32 = arith.constant 0 : i32
    %c0_i32_0 = arith.constant 0 : i32
    return %arg1, %c0_i32 : i32, i32
  }
  func.func @transform_2(%arg0: i32, %arg1: i32) -> (i32, i32) {
    %c0_i32 = arith.constant 0 : i32
    %c0_i32_0 = arith.constant 0 : i32
    return %arg0, %c0_i32 : i32, i32
  }
  func.func @transform_3(%arg0: i32, %arg1: i32) -> (i32, i32) {
    %c0_i32 = arith.constant 0 : i32
    %c0_i32_0 = arith.constant 0 : i32
    return %arg0, %c0_i32 : i32, i32
  }
  func.func @transform_4(%arg0: i32, %arg1: i32) -> (i32, i32) {
    %c0_i32 = arith.constant 0 : i32
    %c0_i32_0 = arith.constant 0 : i32
    return %arg0, %c0_i32 : i32, i32
  }
}

module attributes {stable_mosaic.version = 11 : i64} {
  func.func @bpr_reg_kernel(%arg0: memref<8x32xf32, #tpu.memory_space<vmem>>, %arg1: memref<8x32xf32, #tpu.memory_space<vmem>>, %arg2: memref<8x32xf32, #tpu.memory_space<vmem>>, %arg3: memref<8x32xf32, #tpu.memory_space<vmem>>, %arg4: memref<8x32xf32, #tpu.memory_space<vmem>>, %arg5: memref<8x32xf32, #tpu.memory_space<vmem>>, %arg6: memref<1x1xf32, #tpu.memory_space<smem>>, %arg7: memref<1x1xf32, #tpu.memory_space<smem>>) attributes {dimension_semantics = [], scalar_prefetch = 0 : i64, scratch_operands = 0 : i64, tpu.core_type = #tpu.core_type<tc>} {
    %c0 = arith.constant 0 : index
    %c0_0 = arith.constant 0 : index
    %0 = vector.load %arg0[%c0, %c0_0] : memref<8x32xf32, #tpu.memory_space<vmem>>, vector<8x32xf32>
    %c0_1 = arith.constant 0 : index
    %c0_2 = arith.constant 0 : index
    %1 = vector.load %arg1[%c0_1, %c0_2] : memref<8x32xf32, #tpu.memory_space<vmem>>, vector<8x32xf32>
    %c0_3 = arith.constant 0 : index
    %c0_4 = arith.constant 0 : index
    %2 = vector.load %arg2[%c0_3, %c0_4] : memref<8x32xf32, #tpu.memory_space<vmem>>, vector<8x32xf32>
    %3 = arith.mulf %0, %1 : vector<8x32xf32>
    %cst = arith.constant dense<0.000000e+00> : vector<8xf32>
    %4 = vector.multi_reduction <add>, %3, %cst [1] : vector<8x32xf32> to vector<8xf32>
    %5 = vector.shape_cast %4 : vector<8xf32> to vector<8x1xf32>
    %6 = arith.mulf %0, %2 : vector<8x32xf32>
    %cst_5 = arith.constant dense<0.000000e+00> : vector<8xf32>
    %7 = vector.multi_reduction <add>, %6, %cst_5 [1] : vector<8x32xf32> to vector<8xf32>
    %8 = vector.shape_cast %7 : vector<8xf32> to vector<8x1xf32>
    %9 = arith.subf %8, %5 : vector<8x1xf32>
    %cst_6 = arith.constant 0.000000e+00 : f32
    %10 = vector.broadcast %cst_6 : f32 to vector<8x1xf32>
    %11 = arith.maximumf %9, %10 : vector<8x1xf32>
    %12 = math.absf %9 : vector<8x1xf32>
    %cst_7 = arith.constant 0.000000e+00 : f32
    %13 = vector.broadcast %cst_7 : f32 to vector<8x1xf32>
    %14 = arith.subf %13, %12 : vector<8x1xf32>
    %15 = math.exp %14 : vector<8x1xf32>
    %16 = math.log1p %15 : vector<8x1xf32>
    %17 = arith.addf %11, %16 : vector<8x1xf32>
    %18 = vector.shape_cast %17 : vector<8x1xf32> to vector<1x8x1xf32>
    %cst_8 = arith.constant dense<0.000000e+00> : vector<1xf32>
    %19 = vector.multi_reduction <add>, %18, %cst_8 [1, 2] : vector<1x8x1xf32> to vector<1xf32>
    %20 = vector.shape_cast %19 : vector<1xf32> to vector<1x1x1xf32>
    %21 = vector.extract %20[0, 0, 0] : f32 from vector<1x1x1xf32>
    %cst_9 = arith.constant 8.000000e+00 : f32
    %22 = arith.divf %21, %cst_9 : f32
    %c0_10 = arith.constant 0 : index
    %c0_11 = arith.constant 0 : index
    %23 = memref.load %arg6[%c0_10, %c0_11] : memref<1x1xf32, #tpu.memory_space<smem>>
    memref.store %22, %arg6[%c0_10, %c0_11] : memref<1x1xf32, #tpu.memory_space<smem>>
    %c0_12 = arith.constant 0 : index
    %c0_13 = arith.constant 0 : index
    %24 = vector.load %arg3[%c0_12, %c0_13] : memref<8x32xf32, #tpu.memory_space<vmem>>, vector<8x32xf32>
    %25 = arith.mulf %24, %24 : vector<8x32xf32>
    %26 = vector.shape_cast %25 : vector<8x32xf32> to vector<1x8x32xf32>
    %cst_14 = arith.constant dense<0.000000e+00> : vector<1xf32>
    %27 = vector.multi_reduction <add>, %26, %cst_14 [1, 2] : vector<1x8x32xf32> to vector<1xf32>
    %28 = vector.shape_cast %27 : vector<1xf32> to vector<1x1x1xf32>
    %29 = vector.extract %28[0, 0, 0] : f32 from vector<1x1x1xf32>
    %c0_15 = arith.constant 0 : index
    %c0_16 = arith.constant 0 : index
    %30 = vector.load %arg4[%c0_15, %c0_16] : memref<8x32xf32, #tpu.memory_space<vmem>>, vector<8x32xf32>
    %31 = arith.mulf %30, %30 : vector<8x32xf32>
    %32 = vector.shape_cast %31 : vector<8x32xf32> to vector<1x8x32xf32>
    %cst_17 = arith.constant dense<0.000000e+00> : vector<1xf32>
    %33 = vector.multi_reduction <add>, %32, %cst_17 [1, 2] : vector<1x8x32xf32> to vector<1xf32>
    %34 = vector.shape_cast %33 : vector<1xf32> to vector<1x1x1xf32>
    %35 = vector.extract %34[0, 0, 0] : f32 from vector<1x1x1xf32>
    %36 = arith.addf %29, %35 : f32
    %c0_18 = arith.constant 0 : index
    %c0_19 = arith.constant 0 : index
    %37 = vector.load %arg5[%c0_18, %c0_19] : memref<8x32xf32, #tpu.memory_space<vmem>>, vector<8x32xf32>
    %38 = arith.mulf %37, %37 : vector<8x32xf32>
    %39 = vector.shape_cast %38 : vector<8x32xf32> to vector<1x8x32xf32>
    %cst_20 = arith.constant dense<0.000000e+00> : vector<1xf32>
    %40 = vector.multi_reduction <add>, %39, %cst_20 [1, 2] : vector<1x8x32xf32> to vector<1xf32>
    %41 = vector.shape_cast %40 : vector<1xf32> to vector<1x1x1xf32>
    %42 = vector.extract %41[0, 0, 0] : f32 from vector<1x1x1xf32>
    %43 = arith.addf %36, %42 : f32
    %cst_21 = arith.constant 5.000000e-01 : f32
    %44 = arith.mulf %cst_21, %43 : f32
    %cst_22 = arith.constant 8.000000e+00 : f32
    %45 = arith.divf %44, %cst_22 : f32
    %c0_23 = arith.constant 0 : index
    %c0_24 = arith.constant 0 : index
    %46 = memref.load %arg7[%c0_23, %c0_24] : memref<1x1xf32, #tpu.memory_space<smem>>
    memref.store %45, %arg7[%c0_23, %c0_24] : memref<1x1xf32, #tpu.memory_space<smem>>
    return
  }
}

module attributes {stable_mosaic.version = 11 : i64} {
  func.func @infonce_kernel(%arg0: i32, %arg1: i32, %arg2: memref<8x32xf32, #tpu.memory_space<vmem>>, %arg3: memref<8x32xbf16, #tpu.memory_space<vmem>>, %arg4: memref<80x32xbf16, #tpu.memory_space<vmem>>, %arg5: memref<8x1xf32, #tpu.memory_space<vmem>>, %arg6: memref<8x32xbf16, #tpu.memory_space<vmem>>, %arg7: memref<8x1xf32, #tpu.memory_space<vmem>>, %arg8: memref<8x1xf32, #tpu.memory_space<vmem>>, %arg9: memref<8x1xf32, #tpu.memory_space<vmem>>) attributes {dimension_semantics = [#tpu.dimension_semantics<parallel>, #tpu.dimension_semantics<arbitrary>], iteration_bounds = array<i64: 1, 1>, scalar_prefetch = 0 : i64, scratch_operands = 4 : i64, tpu.core_type = #tpu.core_type<tc>, window_params = [{transform_indices = @transform_0, window_bounds = array<i64: 8, 32>}, {transform_indices = @transform_1, window_bounds = array<i64: 8, 32>}, {transform_indices = @transform_2, window_bounds = array<i64: 80, 32>}, {transform_indices = @transform_3, window_bounds = array<i64: 8, 1>}]} {
    %c0_i32 = arith.constant 0 : i32
    %0 = arith.cmpi eq, %arg1, %c0_i32 : i32
    %1 = arith.extui %0 : i1 to i32
    %c0_i32_0 = arith.constant 0 : i32
    %2 = arith.cmpi ne, %1, %c0_i32_0 : i32
    scf.if %2 {
      %c0_18 = arith.constant 0 : index
      %c0_19 = arith.constant 0 : index
      %26 = vector.load %arg2[%c0_18, %c0_19] : memref<8x32xf32, #tpu.memory_space<vmem>>, vector<8x32xf32>
      %27 = arith.mulf %26, %26 : vector<8x32xf32>
      %cst_20 = arith.constant dense<0.000000e+00> : vector<8xf32>
      %28 = vector.multi_reduction <add>, %27, %cst_20 [1] : vector<8x32xf32> to vector<8xf32>
      %29 = vector.shape_cast %28 : vector<8xf32> to vector<8x1xf32>
      %cst_21 = arith.constant 1.000000e-24 : f32
      %30 = vector.broadcast %cst_21 : f32 to vector<8x1xf32>
      %31 = arith.maximumf %29, %30 : vector<8x1xf32>
      %32 = math.rsqrt %31 : vector<8x1xf32>
      %33 = vector.broadcast %32 : vector<8x1xf32> to vector<8x32xf32>
      %34 = arith.mulf %26, %33 : vector<8x32xf32>
      %cst_22 = arith.constant 5.000000e+00 : f32
      %35 = vector.broadcast %cst_22 : f32 to vector<8x32xf32>
      %36 = arith.mulf %34, %35 : vector<8x32xf32>
      %37 = arith.truncf %36 : vector<8x32xf32> to vector<8x32xbf16>
      %c0_23 = arith.constant 0 : index
      %c0_24 = arith.constant 0 : index
      %38 = vector.load %arg6[%c0_23, %c0_24] : memref<8x32xbf16, #tpu.memory_space<vmem>>, vector<8x32xbf16>
      tpu.vector_store %arg6[%c0_23, %c0_24], %37 {strides = array<i32>} : memref<8x32xbf16, #tpu.memory_space<vmem>>, vector<8x32xbf16>,
      %c0_25 = arith.constant 0 : index
      %c0_26 = arith.constant 0 : index
      %39 = vector.load %arg3[%c0_25, %c0_26] : memref<8x32xbf16, #tpu.memory_space<vmem>>, vector<8x32xbf16>
      %40 = arith.extf %39 : vector<8x32xbf16> to vector<8x32xf32>
      %41 = arith.mulf %36, %40 : vector<8x32xf32>
      %cst_27 = arith.constant dense<0.000000e+00> : vector<8xf32>
      %42 = vector.multi_reduction <add>, %41, %cst_27 [1] : vector<8x32xf32> to vector<8xf32>
      %43 = vector.shape_cast %42 : vector<8xf32> to vector<8x1xf32>
      %c0_28 = arith.constant 0 : index
      %c0_29 = arith.constant 0 : index
      %44 = vector.load %arg7[%c0_28, %c0_29] : memref<8x1xf32, #tpu.memory_space<vmem>>, vector<8x1xf32>
      tpu.vector_store %arg7[%c0_28, %c0_29], %43 {strides = array<i32>} : memref<8x1xf32, #tpu.memory_space<vmem>>, vector<8x1xf32>,
      %cst_30 = arith.constant 0xFF800000 : f32
      %45 = vector.broadcast %cst_30 : f32 to vector<8x1xf32>
      %c0_31 = arith.constant 0 : index
      %c0_32 = arith.constant 0 : index
      %46 = vector.load %arg8[%c0_31, %c0_32] : memref<8x1xf32, #tpu.memory_space<vmem>>, vector<8x1xf32>
      tpu.vector_store %arg8[%c0_31, %c0_32], %45 {strides = array<i32>} : memref<8x1xf32, #tpu.memory_space<vmem>>, vector<8x1xf32>,
      %cst_33 = arith.constant 0.000000e+00 : f32
      %47 = vector.broadcast %cst_33 : f32 to vector<8x1xf32>
      %c0_34 = arith.constant 0 : index
      %c0_35 = arith.constant 0 : index
      %48 = vector.load %arg9[%c0_34, %c0_35] : memref<8x1xf32, #tpu.memory_space<vmem>>, vector<8x1xf32>
      tpu.vector_store %arg9[%c0_34, %c0_35], %47 {strides = array<i32>} : memref<8x1xf32, #tpu.memory_space<vmem>>, vector<8x1xf32>,
    } else {
    }
    %c0 = arith.constant 0 : index
    %c0_1 = arith.constant 0 : index
    %3 = vector.load %arg6[%c0, %c0_1] : memref<8x32xbf16, #tpu.memory_space<vmem>>, vector<8x32xbf16>
    %c0_2 = arith.constant 0 : index
    %c0_3 = arith.constant 0 : index
    %4 = vector.load %arg4[%c0_2, %c0_3] : memref<80x32xbf16, #tpu.memory_space<vmem>>, vector<80x32xbf16>
    %cst = arith.constant dense<0.000000e+00> : vector<8x80xf32>
    %5 = tpu.matmul %3, %4, %cst {dimension_numbers = #tpu.dot_dimension_numbers<[1], [1], [0], [0], [0, 0, 1, 0], [], []>} : vector<8x32xbf16>, vector<80x32xbf16>, vector<8x80xf32> -> vector<8x80xf32>
    %c0_4 = arith.constant 0 : index
    %c0_5 = arith.constant 0 : index
    %6 = vector.load %arg8[%c0_4, %c0_5] : memref<8x1xf32, #tpu.memory_space<vmem>>, vector<8x1xf32>
    %cst_6 = arith.constant dense<0xFF800000> : vector<8xf32>
    %7 = vector.multi_reduction <maximumf>, %5, %cst_6 [1] : vector<8x80xf32> to vector<8xf32>
    %8 = vector.shape_cast %7 : vector<8xf32> to vector<8x1xf32>
    %9 = arith.maximumf %6, %8 : vector<8x1xf32>
    %c0_7 = arith.constant 0 : index
    %c0_8 = arith.constant 0 : index
    %10 = vector.load %arg8[%c0_7, %c0_8] : memref<8x1xf32, #tpu.memory_space<vmem>>, vector<8x1xf32>
    %11 = arith.subf %10, %9 : vector<8x1xf32>
    %12 = math.exp %11 : vector<8x1xf32>
    %c0_9 = arith.constant 0 : index
    %c0_10 = arith.constant 0 : index
    %13 = vector.load %arg9[%c0_9, %c0_10] : memref<8x1xf32, #tpu.memory_space<vmem>>, vector<8x1xf32>
    %14 = arith.mulf %12, %13 : vector<8x1xf32>
    %15 = vector.broadcast %9 : vector<8x1xf32> to vector<8x80xf32>
    %16 = arith.subf %5, %15 : vector<8x80xf32>
    %17 = math.exp %16 : vector<8x80xf32>
    %cst_11 = arith.constant dense<0.000000e+00> : vector<8xf32>
    %18 = vector.multi_reduction <add>, %17, %cst_11 [1] : vector<8x80xf32> to vector<8xf32>
    %19 = vector.shape_cast %18 : vector<8xf32> to vector<8x1xf32>
    %20 = arith.addf %14, %19 : vector<8x1xf32>
    %c0_12 = arith.constant 0 : index
    %c0_13 = arith.constant 0 : index
    %21 = vector.load %arg9[%c0_12, %c0_13] : memref<8x1xf32, #tpu.memory_space<vmem>>, vector<8x1xf32>
    tpu.vector_store %arg9[%c0_12, %c0_13], %20 {strides = array<i32>} : memref<8x1xf32, #tpu.memory_space<vmem>>, vector<8x1xf32>,
    %c0_14 = arith.constant 0 : index
    %c0_15 = arith.constant 0 : index
    %22 = vector.load %arg8[%c0_14, %c0_15] : memref<8x1xf32, #tpu.memory_space<vmem>>, vector<8x1xf32>
    tpu.vector_store %arg8[%c0_14, %c0_15], %9 {strides = array<i32>} : memref<8x1xf32, #tpu.memory_space<vmem>>, vector<8x1xf32>,
    %c0_i32_16 = arith.constant 0 : i32
    %23 = arith.cmpi eq, %arg1, %c0_i32_16 : i32
    %24 = arith.extui %23 : i1 to i32
    %c0_i32_17 = arith.constant 0 : i32
    %25 = arith.cmpi ne, %24, %c0_i32_17 : i32
    scf.if %25 {
      %c0_18 = arith.constant 0 : index
      %c0_19 = arith.constant 0 : index
      %26 = vector.load %arg7[%c0_18, %c0_19] : memref<8x1xf32, #tpu.memory_space<vmem>>, vector<8x1xf32>
      %c0_20 = arith.constant 0 : index
      %c0_21 = arith.constant 0 : index
      %27 = vector.load %arg8[%c0_20, %c0_21] : memref<8x1xf32, #tpu.memory_space<vmem>>, vector<8x1xf32>
      %28 = arith.subf %26, %27 : vector<8x1xf32>
      %29 = math.exp %28 : vector<8x1xf32>
      %c0_22 = arith.constant 0 : index
      %c0_23 = arith.constant 0 : index
      %30 = vector.load %arg9[%c0_22, %c0_23] : memref<8x1xf32, #tpu.memory_space<vmem>>, vector<8x1xf32>
      %31 = arith.divf %29, %30 : vector<8x1xf32>
      %cst_24 = arith.constant 1.000000e-07 : f32
      %32 = vector.broadcast %cst_24 : f32 to vector<8x1xf32>
      %33 = arith.addf %31, %32 : vector<8x1xf32>
      %34 = math.log %33 : vector<8x1xf32>
      %cst_25 = arith.constant 0.000000e+00 : f32
      %35 = vector.broadcast %cst_25 : f32 to vector<8x1xf32>
      %36 = arith.subf %35, %34 : vector<8x1xf32>
      %c0_26 = arith.constant 0 : index
      %c0_27 = arith.constant 0 : index
      %37 = vector.load %arg5[%c0_26, %c0_27] : memref<8x1xf32, #tpu.memory_space<vmem>>, vector<8x1xf32>
      tpu.vector_store %arg5[%c0_26, %c0_27], %36 {strides = array<i32>} : memref<8x1xf32, #tpu.memory_space<vmem>>, vector<8x1xf32>,
    } else {
    }
    return
  }
  func.func @transform_0(%arg0: i32, %arg1: i32) -> (i32, i32) {
    %c0_i32 = arith.constant 0 : i32
    %c0_i32_0 = arith.constant 0 : i32
    return %arg0, %c0_i32 : i32, i32
  }
  func.func @transform_1(%arg0: i32, %arg1: i32) -> (i32, i32) {
    %c0_i32 = arith.constant 0 : i32
    %c0_i32_0 = arith.constant 0 : i32
    return %arg0, %c0_i32 : i32, i32
  }
  func.func @transform_2(%arg0: i32, %arg1: i32) -> (i32, i32) {
    %c0_i32 = arith.constant 0 : i32
    %c0_i32_0 = arith.constant 0 : i32
    return %arg1, %c0_i32 : i32, i32
  }
  func.func @transform_3(%arg0: i32, %arg1: i32) -> (i32, i32) {
    %c0_i32 = arith.constant 0 : i32
    %c0_i32_0 = arith.constant 0 : i32
    return %arg0, %c0_i32 : i32, i32
  }
}

module attributes {stable_mosaic.version = 11 : i64} {
  func.func @infonce_kernel(%arg0: i32, %arg1: i32, %arg2: memref<8x32xf32, #tpu.memory_space<vmem>>, %arg3: memref<8x32xbf16, #tpu.memory_space<vmem>>, %arg4: memref<48x32xbf16, #tpu.memory_space<vmem>>, %arg5: memref<8x1xf32, #tpu.memory_space<vmem>>, %arg6: memref<8x32xbf16, #tpu.memory_space<vmem>>, %arg7: memref<8x1xf32, #tpu.memory_space<vmem>>, %arg8: memref<8x1xf32, #tpu.memory_space<vmem>>, %arg9: memref<8x1xf32, #tpu.memory_space<vmem>>) attributes {dimension_semantics = [#tpu.dimension_semantics<parallel>, #tpu.dimension_semantics<arbitrary>], iteration_bounds = array<i64: 2, 1>, scalar_prefetch = 0 : i64, scratch_operands = 4 : i64, tpu.core_type = #tpu.core_type<tc>, window_params = [{transform_indices = @transform_0, window_bounds = array<i64: 8, 32>}, {transform_indices = @transform_1, window_bounds = array<i64: 8, 32>}, {transform_indices = @transform_2, window_bounds = array<i64: 48, 32>}, {transform_indices = @transform_3, window_bounds = array<i64: 8, 1>}]} {
    %c0_i32 = arith.constant 0 : i32
    %0 = arith.cmpi eq, %arg1, %c0_i32 : i32
    %1 = arith.extui %0 : i1 to i32
    %c0_i32_0 = arith.constant 0 : i32
    %2 = arith.cmpi ne, %1, %c0_i32_0 : i32
    scf.if %2 {
      %c0_18 = arith.constant 0 : index
      %c0_19 = arith.constant 0 : index
      %26 = vector.load %arg2[%c0_18, %c0_19] : memref<8x32xf32, #tpu.memory_space<vmem>>, vector<8x32xf32>
      %27 = arith.mulf %26, %26 : vector<8x32xf32>
      %cst_20 = arith.constant dense<0.000000e+00> : vector<8xf32>
      %28 = vector.multi_reduction <add>, %27, %cst_20 [1] : vector<8x32xf32> to vector<8xf32>
      %29 = vector.shape_cast %28 : vector<8xf32> to vector<8x1xf32>
      %cst_21 = arith.constant 1.000000e-24 : f32
      %30 = vector.broadcast %cst_21 : f32 to vector<8x1xf32>
      %31 = arith.maximumf %29, %30 : vector<8x1xf32>
      %32 = math.rsqrt %31 : vector<8x1xf32>
      %33 = vector.broadcast %32 : vector<8x1xf32> to vector<8x32xf32>
      %34 = arith.mulf %26, %33 : vector<8x32xf32>
      %cst_22 = arith.constant 5.000000e+00 : f32
      %35 = vector.broadcast %cst_22 : f32 to vector<8x32xf32>
      %36 = arith.mulf %34, %35 : vector<8x32xf32>
      %37 = arith.truncf %36 : vector<8x32xf32> to vector<8x32xbf16>
      %c0_23 = arith.constant 0 : index
      %c0_24 = arith.constant 0 : index
      %38 = vector.load %arg6[%c0_23, %c0_24] : memref<8x32xbf16, #tpu.memory_space<vmem>>, vector<8x32xbf16>
      tpu.vector_store %arg6[%c0_23, %c0_24], %37 {strides = array<i32>} : memref<8x32xbf16, #tpu.memory_space<vmem>>, vector<8x32xbf16>,
      %c0_25 = arith.constant 0 : index
      %c0_26 = arith.constant 0 : index
      %39 = vector.load %arg3[%c0_25, %c0_26] : memref<8x32xbf16, #tpu.memory_space<vmem>>, vector<8x32xbf16>
      %40 = arith.extf %39 : vector<8x32xbf16> to vector<8x32xf32>
      %41 = arith.mulf %36, %40 : vector<8x32xf32>
      %cst_27 = arith.constant dense<0.000000e+00> : vector<8xf32>
      %42 = vector.multi_reduction <add>, %41, %cst_27 [1] : vector<8x32xf32> to vector<8xf32>
      %43 = vector.shape_cast %42 : vector<8xf32> to vector<8x1xf32>
      %c0_28 = arith.constant 0 : index
      %c0_29 = arith.constant 0 : index
      %44 = vector.load %arg7[%c0_28, %c0_29] : memref<8x1xf32, #tpu.memory_space<vmem>>, vector<8x1xf32>
      tpu.vector_store %arg7[%c0_28, %c0_29], %43 {strides = array<i32>} : memref<8x1xf32, #tpu.memory_space<vmem>>, vector<8x1xf32>,
      %cst_30 = arith.constant 0xFF800000 : f32
      %45 = vector.broadcast %cst_30 : f32 to vector<8x1xf32>
      %c0_31 = arith.constant 0 : index
      %c0_32 = arith.constant 0 : index
      %46 = vector.load %arg8[%c0_31, %c0_32] : memref<8x1xf32, #tpu.memory_space<vmem>>, vector<8x1xf32>
      tpu.vector_store %arg8[%c0_31, %c0_32], %45 {strides = array<i32>} : memref<8x1xf32, #tpu.memory_space<vmem>>, vector<8x1xf32>,
      %cst_33 = arith.constant 0.000000e+00 : f32
      %47 = vector.broadcast %cst_33 : f32 to vector<8x1xf32>
      %c0_34 = arith.constant 0 : index
      %c0_35 = arith.constant 0 : index
      %48 = vector.load %arg9[%c0_34, %c0_35] : memref<8x1xf32, #tpu.memory_space<vmem>>, vector<8x1xf32>
      tpu.vector_store %arg9[%c0_34, %c0_35], %47 {strides = array<i32>} : memref<8x1xf32, #tpu.memory_space<vmem>>, vector<8x1xf32>,
    } else {
    }
    %c0 = arith.constant 0 : index
    %c0_1 = arith.constant 0 : index
    %3 = vector.load %arg6[%c0, %c0_1] : memref<8x32xbf16, #tpu.memory_space<vmem>>, vector<8x32xbf16>
    %c0_2 = arith.constant 0 : index
    %c0_3 = arith.constant 0 : index
    %4 = vector.load %arg4[%c0_2, %c0_3] : memref<48x32xbf16, #tpu.memory_space<vmem>>, vector<48x32xbf16>
    %cst = arith.constant dense<0.000000e+00> : vector<8x48xf32>
    %5 = tpu.matmul %3, %4, %cst {dimension_numbers = #tpu.dot_dimension_numbers<[1], [1], [0], [0], [0, 0, 1, 0], [], []>} : vector<8x32xbf16>, vector<48x32xbf16>, vector<8x48xf32> -> vector<8x48xf32>
    %c0_4 = arith.constant 0 : index
    %c0_5 = arith.constant 0 : index
    %6 = vector.load %arg8[%c0_4, %c0_5] : memref<8x1xf32, #tpu.memory_space<vmem>>, vector<8x1xf32>
    %cst_6 = arith.constant dense<0xFF800000> : vector<8xf32>
    %7 = vector.multi_reduction <maximumf>, %5, %cst_6 [1] : vector<8x48xf32> to vector<8xf32>
    %8 = vector.shape_cast %7 : vector<8xf32> to vector<8x1xf32>
    %9 = arith.maximumf %6, %8 : vector<8x1xf32>
    %c0_7 = arith.constant 0 : index
    %c0_8 = arith.constant 0 : index
    %10 = vector.load %arg8[%c0_7, %c0_8] : memref<8x1xf32, #tpu.memory_space<vmem>>, vector<8x1xf32>
    %11 = arith.subf %10, %9 : vector<8x1xf32>
    %12 = math.exp %11 : vector<8x1xf32>
    %c0_9 = arith.constant 0 : index
    %c0_10 = arith.constant 0 : index
    %13 = vector.load %arg9[%c0_9, %c0_10] : memref<8x1xf32, #tpu.memory_space<vmem>>, vector<8x1xf32>
    %14 = arith.mulf %12, %13 : vector<8x1xf32>
    %15 = vector.broadcast %9 : vector<8x1xf32> to vector<8x48xf32>
    %16 = arith.subf %5, %15 : vector<8x48xf32>
    %17 = math.exp %16 : vector<8x48xf32>
    %cst_11 = arith.constant dense<0.000000e+00> : vector<8xf32>
    %18 = vector.multi_reduction <add>, %17, %cst_11 [1] : vector<8x48xf32> to vector<8xf32>
    %19 = vector.shape_cast %18 : vector<8xf32> to vector<8x1xf32>
    %20 = arith.addf %14, %19 : vector<8x1xf32>
    %c0_12 = arith.constant 0 : index
    %c0_13 = arith.constant 0 : index
    %21 = vector.load %arg9[%c0_12, %c0_13] : memref<8x1xf32, #tpu.memory_space<vmem>>, vector<8x1xf32>
    tpu.vector_store %arg9[%c0_12, %c0_13], %20 {strides = array<i32>} : memref<8x1xf32, #tpu.memory_space<vmem>>, vector<8x1xf32>,
    %c0_14 = arith.constant 0 : index
    %c0_15 = arith.constant 0 : index
    %22 = vector.load %arg8[%c0_14, %c0_15] : memref<8x1xf32, #tpu.memory_space<vmem>>, vector<8x1xf32>
    tpu.vector_store %arg8[%c0_14, %c0_15], %9 {strides = array<i32>} : memref<8x1xf32, #tpu.memory_space<vmem>>, vector<8x1xf32>,
    %c0_i32_16 = arith.constant 0 : i32
    %23 = arith.cmpi eq, %arg1, %c0_i32_16 : i32
    %24 = arith.extui %23 : i1 to i32
    %c0_i32_17 = arith.constant 0 : i32
    %25 = arith.cmpi ne, %24, %c0_i32_17 : i32
    scf.if %25 {
      %c0_18 = arith.constant 0 : index
      %c0_19 = arith.constant 0 : index
      %26 = vector.load %arg7[%c0_18, %c0_19] : memref<8x1xf32, #tpu.memory_space<vmem>>, vector<8x1xf32>
      %c0_20 = arith.constant 0 : index
      %c0_21 = arith.constant 0 : index
      %27 = vector.load %arg8[%c0_20, %c0_21] : memref<8x1xf32, #tpu.memory_space<vmem>>, vector<8x1xf32>
      %28 = arith.subf %26, %27 : vector<8x1xf32>
      %29 = math.exp %28 : vector<8x1xf32>
      %c0_22 = arith.constant 0 : index
      %c0_23 = arith.constant 0 : index
      %30 = vector.load %arg9[%c0_22, %c0_23] : memref<8x1xf32, #tpu.memory_space<vmem>>, vector<8x1xf32>
      %31 = arith.divf %29, %30 : vector<8x1xf32>
      %cst_24 = arith.constant 1.000000e-07 : f32
      %32 = vector.broadcast %cst_24 : f32 to vector<8x1xf32>
      %33 = arith.addf %31, %32 : vector<8x1xf32>
      %34 = math.log %33 : vector<8x1xf32>
      %cst_25 = arith.constant 0.000000e+00 : f32
      %35 = vector.broadcast %cst_25 : f32 to vector<8x1xf32>
      %36 = arith.subf %35, %34 : vector<8x1xf32>
      %c0_26 = arith.constant 0 : index
      %c0_27 = arith.constant 0 : index
      %37 = vector.load %arg5[%c0_26, %c0_27] : memref<8x1xf32, #tpu.memory_space<vmem>>, vector<8x1xf32>
      tpu.vector_store %arg5[%c0_26, %c0_27], %36 {strides = array<i32>} : memref<8x1xf32, #tpu.memory_space<vmem>>, vector<8x1xf32>,
    } else {
    }
    return
  }
  func.func @transform_0(%arg0: i32, %arg1: i32) -> (i32, i32) {
    %c0_i32 = arith.constant 0 : i32
    %c0_i32_0 = arith.constant 0 : i32
    return %arg0, %c0_i32 : i32, i32
  }
  func.func @transform_1(%arg0: i32, %arg1: i32) -> (i32, i32) {
    %c0_i32 = arith.constant 0 : i32
    %c0_i32_0 = arith.constant 0 : i32
    return %arg0, %c0_i32 : i32, i32
  }
  func.func @transform_2(%arg0: i32, %arg1: i32) -> (i32, i32) {
    %c0_i32 = arith.constant 0 : i32
    %c0_i32_0 = arith.constant 0 : i32
    return %arg1, %c0_i32 : i32, i32
  }
  func.func @transform_3(%arg0: i32, %arg1: i32) -> (i32, i32) {
    %c0_i32 = arith.constant 0 : i32
    %c0_i32_0 = arith.constant 0 : i32
    return %arg0, %c0_i32 : i32, i32
  }
}

module attributes {stable_mosaic.version = 11 : i64} {
  func.func @infonce_kernel(%arg0: i32, %arg1: i32, %arg2: memref<8x32xf32, #tpu.memory_space<vmem>>, %arg3: memref<8x32xbf16, #tpu.memory_space<vmem>>, %arg4: memref<48x32xbf16, #tpu.memory_space<vmem>>, %arg5: memref<8x1xf32, #tpu.memory_space<vmem>>, %arg6: memref<8x32xbf16, #tpu.memory_space<vmem>>, %arg7: memref<8x1xf32, #tpu.memory_space<vmem>>, %arg8: memref<8x1xf32, #tpu.memory_space<vmem>>, %arg9: memref<8x1xf32, #tpu.memory_space<vmem>>) attributes {dimension_semantics = [#tpu.dimension_semantics<parallel>, #tpu.dimension_semantics<arbitrary>], iteration_bounds = array<i64: 1, 1>, scalar_prefetch = 0 : i64, scratch_operands = 4 : i64, tpu.core_type = #tpu.core_type<tc>, window_params = [{transform_indices = @transform_0, window_bounds = array<i64: 8, 32>}, {transform_indices = @transform_1, window_bounds = array<i64: 8, 32>}, {transform_indices = @transform_2, window_bounds = array<i64: 48, 32>}, {transform_indices = @transform_3, window_bounds = array<i64: 8, 1>}]} {
    %c0_i32 = arith.constant 0 : i32
    %0 = arith.cmpi eq, %arg1, %c0_i32 : i32
    %1 = arith.extui %0 : i1 to i32
    %c0_i32_0 = arith.constant 0 : i32
    %2 = arith.cmpi ne, %1, %c0_i32_0 : i32
    scf.if %2 {
      %c0_18 = arith.constant 0 : index
      %c0_19 = arith.constant 0 : index
      %26 = vector.load %arg2[%c0_18, %c0_19] : memref<8x32xf32, #tpu.memory_space<vmem>>, vector<8x32xf32>
      %27 = arith.mulf %26, %26 : vector<8x32xf32>
      %cst_20 = arith.constant dense<0.000000e+00> : vector<8xf32>
      %28 = vector.multi_reduction <add>, %27, %cst_20 [1] : vector<8x32xf32> to vector<8xf32>
      %29 = vector.shape_cast %28 : vector<8xf32> to vector<8x1xf32>
      %cst_21 = arith.constant 1.000000e-24 : f32
      %30 = vector.broadcast %cst_21 : f32 to vector<8x1xf32>
      %31 = arith.maximumf %29, %30 : vector<8x1xf32>
      %32 = math.rsqrt %31 : vector<8x1xf32>
      %33 = vector.broadcast %32 : vector<8x1xf32> to vector<8x32xf32>
      %34 = arith.mulf %26, %33 : vector<8x32xf32>
      %cst_22 = arith.constant 5.000000e+00 : f32
      %35 = vector.broadcast %cst_22 : f32 to vector<8x32xf32>
      %36 = arith.mulf %34, %35 : vector<8x32xf32>
      %37 = arith.truncf %36 : vector<8x32xf32> to vector<8x32xbf16>
      %c0_23 = arith.constant 0 : index
      %c0_24 = arith.constant 0 : index
      %38 = vector.load %arg6[%c0_23, %c0_24] : memref<8x32xbf16, #tpu.memory_space<vmem>>, vector<8x32xbf16>
      tpu.vector_store %arg6[%c0_23, %c0_24], %37 {strides = array<i32>} : memref<8x32xbf16, #tpu.memory_space<vmem>>, vector<8x32xbf16>,
      %c0_25 = arith.constant 0 : index
      %c0_26 = arith.constant 0 : index
      %39 = vector.load %arg3[%c0_25, %c0_26] : memref<8x32xbf16, #tpu.memory_space<vmem>>, vector<8x32xbf16>
      %40 = arith.extf %39 : vector<8x32xbf16> to vector<8x32xf32>
      %41 = arith.mulf %36, %40 : vector<8x32xf32>
      %cst_27 = arith.constant dense<0.000000e+00> : vector<8xf32>
      %42 = vector.multi_reduction <add>, %41, %cst_27 [1] : vector<8x32xf32> to vector<8xf32>
      %43 = vector.shape_cast %42 : vector<8xf32> to vector<8x1xf32>
      %c0_28 = arith.constant 0 : index
      %c0_29 = arith.constant 0 : index
      %44 = vector.load %arg7[%c0_28, %c0_29] : memref<8x1xf32, #tpu.memory_space<vmem>>, vector<8x1xf32>
      tpu.vector_store %arg7[%c0_28, %c0_29], %43 {strides = array<i32>} : memref<8x1xf32, #tpu.memory_space<vmem>>, vector<8x1xf32>,
      %cst_30 = arith.constant 0xFF800000 : f32
      %45 = vector.broadcast %cst_30 : f32 to vector<8x1xf32>
      %c0_31 = arith.constant 0 : index
      %c0_32 = arith.constant 0 : index
      %46 = vector.load %arg8[%c0_31, %c0_32] : memref<8x1xf32, #tpu.memory_space<vmem>>, vector<8x1xf32>
      tpu.vector_store %arg8[%c0_31, %c0_32], %45 {strides = array<i32>} : memref<8x1xf32, #tpu.memory_space<vmem>>, vector<8x1xf32>,
      %cst_33 = arith.constant 0.000000e+00 : f32
      %47 = vector.broadcast %cst_33 : f32 to vector<8x1xf32>
      %c0_34 = arith.constant 0 : index
      %c0_35 = arith.constant 0 : index
      %48 = vector.load %arg9[%c0_34, %c0_35] : memref<8x1xf32, #tpu.memory_space<vmem>>, vector<8x1xf32>
      tpu.vector_store %arg9[%c0_34, %c0_35], %47 {strides = array<i32>} : memref<8x1xf32, #tpu.memory_space<vmem>>, vector<8x1xf32>,
    } else {
    }
    %c0 = arith.constant 0 : index
    %c0_1 = arith.constant 0 : index
    %3 = vector.load %arg6[%c0, %c0_1] : memref<8x32xbf16, #tpu.memory_space<vmem>>, vector<8x32xbf16>
    %c0_2 = arith.constant 0 : index
    %c0_3 = arith.constant 0 : index
    %4 = vector.load %arg4[%c0_2, %c0_3] : memref<48x32xbf16, #tpu.memory_space<vmem>>, vector<48x32xbf16>
    %cst = arith.constant dense<0.000000e+00> : vector<8x48xf32>
    %5 = tpu.matmul %3, %4, %cst {dimension_numbers = #tpu.dot_dimension_numbers<[1], [1], [0], [0], [0, 0, 1, 0], [], []>} : vector<8x32xbf16>, vector<48x32xbf16>, vector<8x48xf32> -> vector<8x48xf32>
    %c0_4 = arith.constant 0 : index
    %c0_5 = arith.constant 0 : index
    %6 = vector.load %arg8[%c0_4, %c0_5] : memref<8x1xf32, #tpu.memory_space<vmem>>, vector<8x1xf32>
    %cst_6 = arith.constant dense<0xFF800000> : vector<8xf32>
    %7 = vector.multi_reduction <maximumf>, %5, %cst_6 [1] : vector<8x48xf32> to vector<8xf32>
    %8 = vector.shape_cast %7 : vector<8xf32> to vector<8x1xf32>
    %9 = arith.maximumf %6, %8 : vector<8x1xf32>
    %c0_7 = arith.constant 0 : index
    %c0_8 = arith.constant 0 : index
    %10 = vector.load %arg8[%c0_7, %c0_8] : memref<8x1xf32, #tpu.memory_space<vmem>>, vector<8x1xf32>
    %11 = arith.subf %10, %9 : vector<8x1xf32>
    %12 = math.exp %11 : vector<8x1xf32>
    %c0_9 = arith.constant 0 : index
    %c0_10 = arith.constant 0 : index
    %13 = vector.load %arg9[%c0_9, %c0_10] : memref<8x1xf32, #tpu.memory_space<vmem>>, vector<8x1xf32>
    %14 = arith.mulf %12, %13 : vector<8x1xf32>
    %15 = vector.broadcast %9 : vector<8x1xf32> to vector<8x48xf32>
    %16 = arith.subf %5, %15 : vector<8x48xf32>
    %17 = math.exp %16 : vector<8x48xf32>
    %cst_11 = arith.constant dense<0.000000e+00> : vector<8xf32>
    %18 = vector.multi_reduction <add>, %17, %cst_11 [1] : vector<8x48xf32> to vector<8xf32>
    %19 = vector.shape_cast %18 : vector<8xf32> to vector<8x1xf32>
    %20 = arith.addf %14, %19 : vector<8x1xf32>
    %c0_12 = arith.constant 0 : index
    %c0_13 = arith.constant 0 : index
    %21 = vector.load %arg9[%c0_12, %c0_13] : memref<8x1xf32, #tpu.memory_space<vmem>>, vector<8x1xf32>
    tpu.vector_store %arg9[%c0_12, %c0_13], %20 {strides = array<i32>} : memref<8x1xf32, #tpu.memory_space<vmem>>, vector<8x1xf32>,
    %c0_14 = arith.constant 0 : index
    %c0_15 = arith.constant 0 : index
    %22 = vector.load %arg8[%c0_14, %c0_15] : memref<8x1xf32, #tpu.memory_space<vmem>>, vector<8x1xf32>
    tpu.vector_store %arg8[%c0_14, %c0_15], %9 {strides = array<i32>} : memref<8x1xf32, #tpu.memory_space<vmem>>, vector<8x1xf32>,
    %c0_i32_16 = arith.constant 0 : i32
    %23 = arith.cmpi eq, %arg1, %c0_i32_16 : i32
    %24 = arith.extui %23 : i1 to i32
    %c0_i32_17 = arith.constant 0 : i32
    %25 = arith.cmpi ne, %24, %c0_i32_17 : i32
    scf.if %25 {
      %c0_18 = arith.constant 0 : index
      %c0_19 = arith.constant 0 : index
      %26 = vector.load %arg7[%c0_18, %c0_19] : memref<8x1xf32, #tpu.memory_space<vmem>>, vector<8x1xf32>
      %c0_20 = arith.constant 0 : index
      %c0_21 = arith.constant 0 : index
      %27 = vector.load %arg8[%c0_20, %c0_21] : memref<8x1xf32, #tpu.memory_space<vmem>>, vector<8x1xf32>
      %28 = arith.subf %26, %27 : vector<8x1xf32>
      %29 = math.exp %28 : vector<8x1xf32>
      %c0_22 = arith.constant 0 : index
      %c0_23 = arith.constant 0 : index
      %30 = vector.load %arg9[%c0_22, %c0_23] : memref<8x1xf32, #tpu.memory_space<vmem>>, vector<8x1xf32>
      %31 = arith.divf %29, %30 : vector<8x1xf32>
      %cst_24 = arith.constant 1.000000e-07 : f32
      %32 = vector.broadcast %cst_24 : f32 to vector<8x1xf32>
      %33 = arith.addf %31, %32 : vector<8x1xf32>
      %34 = math.log %33 : vector<8x1xf32>
      %cst_25 = arith.constant 0.000000e+00 : f32
      %35 = vector.broadcast %cst_25 : f32 to vector<8x1xf32>
      %36 = arith.subf %35, %34 : vector<8x1xf32>
      %c0_26 = arith.constant 0 : index
      %c0_27 = arith.constant 0 : index
      %37 = vector.load %arg5[%c0_26, %c0_27] : memref<8x1xf32, #tpu.memory_space<vmem>>, vector<8x1xf32>
      tpu.vector_store %arg5[%c0_26, %c0_27], %36 {strides = array<i32>} : memref<8x1xf32, #tpu.memory_space<vmem>>, vector<8x1xf32>,
    } else {
    }
    return
  }
  func.func @transform_0(%arg0: i32, %arg1: i32) -> (i32, i32) {
    %c0_i32 = arith.constant 0 : i32
    %c0_i32_0 = arith.constant 0 : i32
    return %arg0, %c0_i32 : i32, i32
  }
  func.func @transform_1(%arg0: i32, %arg1: i32) -> (i32, i32) {
    %c0_i32 = arith.constant 0 : i32
    %c0_i32_0 = arith.constant 0 : i32
    return %arg0, %c0_i32 : i32, i32
  }
  func.func @transform_2(%arg0: i32, %arg1: i32) -> (i32, i32) {
    %c0_i32 = arith.constant 0 : i32
    %c0_i32_0 = arith.constant 0 : i32
    return %arg1, %c0_i32 : i32, i32
  }
  func.func @transform_3(%arg0: i32, %arg1: i32) -> (i32, i32) {
    %c0_i32 = arith.constant 0 : i32
    %c0_i32_0 = arith.constant 0 : i32
    return %arg0, %c0_i32 : i32, i32
  }
}

module attributes {stable_mosaic.version = 11 : i64} {
  func.func @infonce_kernel(%arg0: i32, %arg1: i32, %arg2: memref<8x32xf32, #tpu.memory_space<vmem>>, %arg3: memref<8x32xbf16, #tpu.memory_space<vmem>>, %arg4: memref<80x32xbf16, #tpu.memory_space<vmem>>, %arg5: memref<8x1xf32, #tpu.memory_space<vmem>>, %arg6: memref<8x32xbf16, #tpu.memory_space<vmem>>, %arg7: memref<8x1xf32, #tpu.memory_space<vmem>>, %arg8: memref<8x1xf32, #tpu.memory_space<vmem>>, %arg9: memref<8x1xf32, #tpu.memory_space<vmem>>) attributes {dimension_semantics = [#tpu.dimension_semantics<parallel>, #tpu.dimension_semantics<arbitrary>], iteration_bounds = array<i64: 2, 1>, scalar_prefetch = 0 : i64, scratch_operands = 4 : i64, tpu.core_type = #tpu.core_type<tc>, window_params = [{transform_indices = @transform_0, window_bounds = array<i64: 8, 32>}, {transform_indices = @transform_1, window_bounds = array<i64: 8, 32>}, {transform_indices = @transform_2, window_bounds = array<i64: 80, 32>}, {transform_indices = @transform_3, window_bounds = array<i64: 8, 1>}]} {
    %c0_i32 = arith.constant 0 : i32
    %0 = arith.cmpi eq, %arg1, %c0_i32 : i32
    %1 = arith.extui %0 : i1 to i32
    %c0_i32_0 = arith.constant 0 : i32
    %2 = arith.cmpi ne, %1, %c0_i32_0 : i32
    scf.if %2 {
      %c0_18 = arith.constant 0 : index
      %c0_19 = arith.constant 0 : index
      %26 = vector.load %arg2[%c0_18, %c0_19] : memref<8x32xf32, #tpu.memory_space<vmem>>, vector<8x32xf32>
      %27 = arith.mulf %26, %26 : vector<8x32xf32>
      %cst_20 = arith.constant dense<0.000000e+00> : vector<8xf32>
      %28 = vector.multi_reduction <add>, %27, %cst_20 [1] : vector<8x32xf32> to vector<8xf32>
      %29 = vector.shape_cast %28 : vector<8xf32> to vector<8x1xf32>
      %cst_21 = arith.constant 1.000000e-24 : f32
      %30 = vector.broadcast %cst_21 : f32 to vector<8x1xf32>
      %31 = arith.maximumf %29, %30 : vector<8x1xf32>
      %32 = math.rsqrt %31 : vector<8x1xf32>
      %33 = vector.broadcast %32 : vector<8x1xf32> to vector<8x32xf32>
      %34 = arith.mulf %26, %33 : vector<8x32xf32>
      %cst_22 = arith.constant 5.000000e+00 : f32
      %35 = vector.broadcast %cst_22 : f32 to vector<8x32xf32>
      %36 = arith.mulf %34, %35 : vector<8x32xf32>
      %37 = arith.truncf %36 : vector<8x32xf32> to vector<8x32xbf16>
      %c0_23 = arith.constant 0 : index
      %c0_24 = arith.constant 0 : index
      %38 = vector.load %arg6[%c0_23, %c0_24] : memref<8x32xbf16, #tpu.memory_space<vmem>>, vector<8x32xbf16>
      tpu.vector_store %arg6[%c0_23, %c0_24], %37 {strides = array<i32>} : memref<8x32xbf16, #tpu.memory_space<vmem>>, vector<8x32xbf16>,
      %c0_25 = arith.constant 0 : index
      %c0_26 = arith.constant 0 : index
      %39 = vector.load %arg3[%c0_25, %c0_26] : memref<8x32xbf16, #tpu.memory_space<vmem>>, vector<8x32xbf16>
      %40 = arith.extf %39 : vector<8x32xbf16> to vector<8x32xf32>
      %41 = arith.mulf %36, %40 : vector<8x32xf32>
      %cst_27 = arith.constant dense<0.000000e+00> : vector<8xf32>
      %42 = vector.multi_reduction <add>, %41, %cst_27 [1] : vector<8x32xf32> to vector<8xf32>
      %43 = vector.shape_cast %42 : vector<8xf32> to vector<8x1xf32>
      %c0_28 = arith.constant 0 : index
      %c0_29 = arith.constant 0 : index
      %44 = vector.load %arg7[%c0_28, %c0_29] : memref<8x1xf32, #tpu.memory_space<vmem>>, vector<8x1xf32>
      tpu.vector_store %arg7[%c0_28, %c0_29], %43 {strides = array<i32>} : memref<8x1xf32, #tpu.memory_space<vmem>>, vector<8x1xf32>,
      %cst_30 = arith.constant 0xFF800000 : f32
      %45 = vector.broadcast %cst_30 : f32 to vector<8x1xf32>
      %c0_31 = arith.constant 0 : index
      %c0_32 = arith.constant 0 : index
      %46 = vector.load %arg8[%c0_31, %c0_32] : memref<8x1xf32, #tpu.memory_space<vmem>>, vector<8x1xf32>
      tpu.vector_store %arg8[%c0_31, %c0_32], %45 {strides = array<i32>} : memref<8x1xf32, #tpu.memory_space<vmem>>, vector<8x1xf32>,
      %cst_33 = arith.constant 0.000000e+00 : f32
      %47 = vector.broadcast %cst_33 : f32 to vector<8x1xf32>
      %c0_34 = arith.constant 0 : index
      %c0_35 = arith.constant 0 : index
      %48 = vector.load %arg9[%c0_34, %c0_35] : memref<8x1xf32, #tpu.memory_space<vmem>>, vector<8x1xf32>
      tpu.vector_store %arg9[%c0_34, %c0_35], %47 {strides = array<i32>} : memref<8x1xf32, #tpu.memory_space<vmem>>, vector<8x1xf32>,
    } else {
    }
    %c0 = arith.constant 0 : index
    %c0_1 = arith.constant 0 : index
    %3 = vector.load %arg6[%c0, %c0_1] : memref<8x32xbf16, #tpu.memory_space<vmem>>, vector<8x32xbf16>
    %c0_2 = arith.constant 0 : index
    %c0_3 = arith.constant 0 : index
    %4 = vector.load %arg4[%c0_2, %c0_3] : memref<80x32xbf16, #tpu.memory_space<vmem>>, vector<80x32xbf16>
    %cst = arith.constant dense<0.000000e+00> : vector<8x80xf32>
    %5 = tpu.matmul %3, %4, %cst {dimension_numbers = #tpu.dot_dimension_numbers<[1], [1], [0], [0], [0, 0, 1, 0], [], []>} : vector<8x32xbf16>, vector<80x32xbf16>, vector<8x80xf32> -> vector<8x80xf32>
    %c0_4 = arith.constant 0 : index
    %c0_5 = arith.constant 0 : index
    %6 = vector.load %arg8[%c0_4, %c0_5] : memref<8x1xf32, #tpu.memory_space<vmem>>, vector<8x1xf32>
    %cst_6 = arith.constant dense<0xFF800000> : vector<8xf32>
    %7 = vector.multi_reduction <maximumf>, %5, %cst_6 [1] : vector<8x80xf32> to vector<8xf32>
    %8 = vector.shape_cast %7 : vector<8xf32> to vector<8x1xf32>
    %9 = arith.maximumf %6, %8 : vector<8x1xf32>
    %c0_7 = arith.constant 0 : index
    %c0_8 = arith.constant 0 : index
    %10 = vector.load %arg8[%c0_7, %c0_8] : memref<8x1xf32, #tpu.memory_space<vmem>>, vector<8x1xf32>
    %11 = arith.subf %10, %9 : vector<8x1xf32>
    %12 = math.exp %11 : vector<8x1xf32>
    %c0_9 = arith.constant 0 : index
    %c0_10 = arith.constant 0 : index
    %13 = vector.load %arg9[%c0_9, %c0_10] : memref<8x1xf32, #tpu.memory_space<vmem>>, vector<8x1xf32>
    %14 = arith.mulf %12, %13 : vector<8x1xf32>
    %15 = vector.broadcast %9 : vector<8x1xf32> to vector<8x80xf32>
    %16 = arith.subf %5, %15 : vector<8x80xf32>
    %17 = math.exp %16 : vector<8x80xf32>
    %cst_11 = arith.constant dense<0.000000e+00> : vector<8xf32>
    %18 = vector.multi_reduction <add>, %17, %cst_11 [1] : vector<8x80xf32> to vector<8xf32>
    %19 = vector.shape_cast %18 : vector<8xf32> to vector<8x1xf32>
    %20 = arith.addf %14, %19 : vector<8x1xf32>
    %c0_12 = arith.constant 0 : index
    %c0_13 = arith.constant 0 : index
    %21 = vector.load %arg9[%c0_12, %c0_13] : memref<8x1xf32, #tpu.memory_space<vmem>>, vector<8x1xf32>
    tpu.vector_store %arg9[%c0_12, %c0_13], %20 {strides = array<i32>} : memref<8x1xf32, #tpu.memory_space<vmem>>, vector<8x1xf32>,
    %c0_14 = arith.constant 0 : index
    %c0_15 = arith.constant 0 : index
    %22 = vector.load %arg8[%c0_14, %c0_15] : memref<8x1xf32, #tpu.memory_space<vmem>>, vector<8x1xf32>
    tpu.vector_store %arg8[%c0_14, %c0_15], %9 {strides = array<i32>} : memref<8x1xf32, #tpu.memory_space<vmem>>, vector<8x1xf32>,
    %c0_i32_16 = arith.constant 0 : i32
    %23 = arith.cmpi eq, %arg1, %c0_i32_16 : i32
    %24 = arith.extui %23 : i1 to i32
    %c0_i32_17 = arith.constant 0 : i32
    %25 = arith.cmpi ne, %24, %c0_i32_17 : i32
    scf.if %25 {
      %c0_18 = arith.constant 0 : index
      %c0_19 = arith.constant 0 : index
      %26 = vector.load %arg7[%c0_18, %c0_19] : memref<8x1xf32, #tpu.memory_space<vmem>>, vector<8x1xf32>
      %c0_20 = arith.constant 0 : index
      %c0_21 = arith.constant 0 : index
      %27 = vector.load %arg8[%c0_20, %c0_21] : memref<8x1xf32, #tpu.memory_space<vmem>>, vector<8x1xf32>
      %28 = arith.subf %26, %27 : vector<8x1xf32>
      %29 = math.exp %28 : vector<8x1xf32>
      %c0_22 = arith.constant 0 : index
      %c0_23 = arith.constant 0 : index
      %30 = vector.load %arg9[%c0_22, %c0_23] : memref<8x1xf32, #tpu.memory_space<vmem>>, vector<8x1xf32>
      %31 = arith.divf %29, %30 : vector<8x1xf32>
      %cst_24 = arith.constant 1.000000e-07 : f32
      %32 = vector.broadcast %cst_24 : f32 to vector<8x1xf32>
      %33 = arith.addf %31, %32 : vector<8x1xf32>
      %34 = math.log %33 : vector<8x1xf32>
      %cst_25 = arith.constant 0.000000e+00 : f32
      %35 = vector.broadcast %cst_25 : f32 to vector<8x1xf32>
      %36 = arith.subf %35, %34 : vector<8x1xf32>
      %c0_26 = arith.constant 0 : index
      %c0_27 = arith.constant 0 : index
      %37 = vector.load %arg5[%c0_26, %c0_27] : memref<8x1xf32, #tpu.memory_space<vmem>>, vector<8x1xf32>
      tpu.vector_store %arg5[%c0_26, %c0_27], %36 {strides = array<i32>} : memref<8x1xf32, #tpu.memory_space<vmem>>, vector<8x1xf32>,
    } else {
    }
    return
  }
  func.func @transform_0(%arg0: i32, %arg1: i32) -> (i32, i32) {
    %c0_i32 = arith.constant 0 : i32
    %c0_i32_0 = arith.constant 0 : i32
    return %arg0, %c0_i32 : i32, i32
  }
  func.func @transform_1(%arg0: i32, %arg1: i32) -> (i32, i32) {
    %c0_i32 = arith.constant 0 : i32
    %c0_i32_0 = arith.constant 0 : i32
    return %arg0, %c0_i32 : i32, i32
  }
  func.func @transform_2(%arg0: i32, %arg1: i32) -> (i32, i32) {
    %c0_i32 = arith.constant 0 : i32
    %c0_i32_0 = arith.constant 0 : i32
    return %arg1, %c0_i32 : i32, i32
  }
  func.func @transform_3(%arg0: i32, %arg1: i32) -> (i32, i32) {
    %c0_i32 = arith.constant 0 : i32
    %c0_i32_0 = arith.constant 0 : i32
    return %arg0, %c0_i32 : i32, i32
  }
}

</mosaic_0001>

<bundles_post_ra>
// kernel: cgcl_forward.11
= control target key start
LH: loop header
LB: loop body
LE: loop exit
PB: predicated region body
PF: predicated region fallthrough
CT: control target
= control target key end

     0   :  { %13 = vsyncpa [#allocation3], 0  ;;  %vm31_vm0 = vcmask 261120   ;;  %s267_s0 = inlined_call_operand.vmem [shape: f32[8,32], index: 0, kind: input, shape index: {}]   ;;  %s268_s1 = inlined_call_operand.vmem [shape: f32[8,32], index: 1, kind: input, shape index: {}]   ;;  %s269_s2 = inlined_call_operand.vmem [shape: f32[8,32], index: 2, kind: input, shape index: {}]   ;;  %s270_s3 = inlined_call_operand.vmem [shape: f32[8,32], index: 3, kind: input, shape index: {}]   ;;  %s271_s4 = inlined_call_operand.vmem [shape: f32[8,32], index: 4, kind: input, shape index: {}]   ;;  %s272_s5 = inlined_call_operand.vmem [shape: f32[8,32], index: 5, kind: input, shape index: {}]   ;;  %s273_s6 = inlined_call_operand.hbm [shape: f32[1,1], index: 6, kind: output, shape index: {0}]   ;;  %s274_s7 = inlined_call_operand.hbm [shape: f32[1,1], index: 7, kind: output, shape index: {1}]  }
   0x1   :  { %v27_v0 = vld [vmem:[%s267_s0] sm:$0xff] }
   0x2   :  { %v28_v1 = vld [vmem:[%s268_s1] sm:$0xff] }
   0x3   :  { %v29_v2 = vld [vmem:[%s269_s2] sm:$0xff]  ;;  %v30_v3 = vmul.f32 %v28_v1, %v27_v0 }
   0x4   :  { %v35_v4 = vmul.f32 %v29_v2, %v27_v0 }
   0x5   :  { %14 = vsyncpa [#allocation5], 0  ;;  %v32_v5 = vsel %vm31_vm0, %v30_v3, 0.0  ;;  %v71_v7 = vld [vmem:[%s270_s3] sm:$0xff]  ;;  %vm55_vm2 = vcmask 7168   ;;  %s154_s16 = scalar_lea.hbm %s273_s6, 16 }
   0x6   :  { %33 = vadd.xlane.f32.xlu0 %v32_v5  ;;  %v36_v6 = vsel %vm31_vm0, %v35_v4, 0.0  ;;  %v83_v8 = vld [vmem:[%s271_s4] sm:$0xff]  ;;  %v72_v9 = vmul.f32 %v71_v7, %v71_v7  ;;  %p155_p0 = scmp.ne.s32.totalorder %s273_s6, %s154_s16  ;;  %p158_p1 = scmp.lt.u32.totalorder %s154_s16, %s273_s6 }
   0x7   :  { %v84_v10 = vmul.f32 %v83_v8, %v83_v8  ;;  %v96_v27 = vld [vmem:[%s272_s5] sm:$0xff] }
   0x8   :  { %v73_v11 = vsel %vm31_vm0, %v72_v9, 0.0  ;;  %v97_v31 = vmul.f32 %v96_v27, %v96_v27  ;;  %p160_p2 = pnand %p158_p1, %p155_p0 }
   0x9   :  { %v85_v12 = vsel %vm31_vm0, %v84_v10, 0.0  ;;  %74 = vadd.xlane.f32.xlu1 %v73_v11 }
   0xa   :  { %37 = vadd.xlane.f32.xlu0 %v36_v6  ;;  %v98_v33 = vsel %vm31_vm0, %v97_v31, 0.0 }
   0xe   :  { %86 = vadd.xlane.f32.xlu0 %v85_v12 }
  0x93   :  { %v34_v13 = vpop.xlane.xlu0 %33 }
  0x96   :  { %v75_v34 = vpop.xlane.xlu1 %74 }
  0x97   :  { %v38_v14 = vpop.xlane.xlu0 %37  ;;  %v76_v36 = vrot.slane %v75_v34, 4 }
  0x98   :  { %v39_v15 = vsub.f32 %v38_v14, %v34_v13 }
  0x99   :  { %v77_v38 = vadd.f32 %v76_v36, %v75_v34 }
  0x9a   :  { %v41_v16 = vand.u32 2147483647, %v39_v15  ;;  %v40_v28 = vmax.f32 %v39_v15, 0.0 }
  0x9b   :  { %v87_v35 = vpop.xlane.xlu0 %86  ;;  %v78_v40 = vrot.slane %v77_v38, 2 }
  0x9c   :  { %v42_v17 = vsub.f32 0.0, %v41_v16  ;;  %v88_v37 = vrot.slane %v87_v35, 4 }
  0x9d   :  { %v79_v46 = vadd.f32 %v78_v40, %v77_v38 }
  0x9e   :  { %v43_v18 = vmul.f32 1.442695, %v42_v17  ;;  %v89_v39 = vadd.f32 %v88_v37, %v87_v35 }
  0x9f   :  { %v80_v52 = vrot.slane %v79_v46, 1 }
  0xa0   :  { %150 = vpow2.f32 %v43_v18  ;;  %v90_v42 = vrot.slane %v89_v39, 2 }
  0xa1   :  { %v81_v58 = vadd.f32 %v80_v52, %v79_v46 }
  0xa2   :  { %v91_v47 = vadd.f32 %v90_v42, %v89_v39 }
  0xa4   :  { %v92_v55 = vrot.slane %v91_v47, 1 }
  0xa6   :  { %v93_v59 = vadd.f32 %v92_v55, %v91_v47 }
  0xaa   :  { %v151_v19 = vpop.eup %150 }
  0xab   :  { %v45_v20 = vadd.f32 1.0, %v151_v19  ;;  %v48_v21 = vmul.f32 -0.5, %v151_v19  ;;  %v51_v23 = vand.u32 2147483647, %v151_v19 }
  0xad   :  { %152 = vlog2.f32 %v45_v20  ;;  %v49_v22 = vadd.f32 1.0, %v48_v21  ;;  %vm52_vm1 = vcmp.lt.f32.partialorder %v51_v23, 0.0004427343 }
  0xaf   :  { %v50_v26 = vmul.f32 %v151_v19, %v49_v22 }
  0xb7   :  { %v153_v24 = vpop.eup %152 }
  0xb8   :  { %v47_v25 = vmul.f32 0.6931472, %v153_v24 }
  0xba   :  { %v53_v29 = vsel %vm52_vm1, %v50_v26, %v47_v25 }
  0xbb   :  { %v54_v30 = vadd.f32 %v53_v29, %v40_v28 }
  0xbd   :  { %v56_v32 = vsel %vm55_vm2, %v54_v30, 0.0 }
  0xbe   :  { %57 = vadd.xlane.f32.xlu1 %v56_v32 }
  0xc2   :  { %99 = vadd.xlane.f32.xlu1 %v98_v33 }
 0x14b   :  { %v58_v41 = vpop.xlane.xlu1 %57 }
 0x14c   :  { %v59_v43 = vrot.slane %v58_v41, 4 }
 0x14e   :  { %v60_v44 = vadd.f32 %v59_v43, %v58_v41 }
 0x14f   :  { %v100_v45 = vpop.xlane.xlu1 %99 }
 0x150   :  { %v61_v48 = vrot.slane %v60_v44, 2  ;;  %v101_v49 = vrot.slane %v100_v45, 4 }
 0x152   :  { %v102_v50 = vadd.f32 %v101_v49, %v100_v45  ;;  %v62_v51 = vadd.f32 %v61_v48, %v60_v44 }
 0x154   :  { %v103_v53 = vrot.slane %v102_v50, 2  ;;  %v63_v54 = vrot.slane %v62_v51, 1 }
 0x156   :  { %v104_v56 = vadd.f32 %v103_v53, %v102_v50  ;;  %v64_v57 = vadd.f32 %v63_v54, %v62_v51 }
 0x158   :  { %140 = vpush %v64_v57  ;;  %v105_v60 = vrot.slane %v104_v56, 1 }
 0x159   :  { %142 = vpush %v81_v58 }
 0x15a   :  { %144 = vpush %v93_v59  ;;  %v106_v61 = vadd.f32 %v105_v60, %v104_v56 }
 0x15c   :  { %146 = vpush %v106_v61 }
 0x189   :  { %s141_s4 = spop %140 }
 0x18a   :  { %s68_s5 = smul.f32 0.125, %s141_s4  ;;  %s143_s9 = spop %142 }
 0x18b   :  { %s145_s10 = spop %144 }
 0x18c   :  { %s95_s11 = sadd.f32 %s145_s10, %s143_s9 }
 0x18d   :  { %s147_s12 = spop %146  ;;  %70 = sst [smem:[#allocation2]] %s68_s5 }
 0x18e   :  { %s108_s13 = sadd.f32 %s147_s12, %s95_s11 }
 0x18f   :  { %163 = shalt.err (!%p160_p2)
}
 0x190   :  { %s178_s21 = smov [#allocation2]   ;;  %s109_s24 = smul.f32 0.5, %s108_s13 }
 0x191   :  { %122 = dma.smem_to_hbm %s178_s21, 16, %s273_s6, [#allocation3]  }
 0x192   :  { %s112_s25 = smul.f32 0.125, %s109_s24  ;;  %s164_s28 = scalar_lea.hbm %s274_s7, 16 }
 0x193   :  { %p165_p3 = scmp.ne.s32.totalorder %s274_s7, %s164_s28  ;;  %p168_p4 = scmp.lt.u32.totalorder %s164_s28, %s274_s7 }
 0x194   :  { %114 = sst [smem:[#allocation4]] %s112_s25 }
 0x195   :  { %p170_p5 = pnand %p168_p4, %p165_p3 }
 0x197   :  { %173 = shalt.err (!%p170_p5)
}
 0x198   :  { %s179_s1 = smov [#allocation4]  }
 0x199   :  { %130 = dma.smem_to_hbm %s179_s1, 16, %s274_s7, [#allocation5]  }
 0x19a   :  { %174 = dma.done.wait [#allocation3], 16  }
 0x19b   :  { %175 = vsyncadd [#allocation3], 4294967280 }
 0x19c   :  { %176 = dma.done.wait [#allocation5], 16  }
 0x19d   :  { %177 = vsyncadd [#allocation5], 4294967280 }
 0x19e   :  { %137 = sfence }
 0x19f   :  { %138 = vsyncpa [#allocation3], 1 }
 0x1a0   :  { %139 = vsyncpa [#allocation5], 1 }

// kernel: cgcl_forward.12
= control target key start
LH: loop header
LB: loop body
LE: loop exit
PB: predicated region body
PF: predicated region fallthrough
CT: control target
= control target key end

     0   :  { %vm40_vm0 = vcmask 261120   ;;  %vm201_vm1 = vcmask 257024   ;;  %s504_s0 = inlined_call_operand.vmem [shape: f32[128,32], index: 0, kind: input, shape index: {}]   ;;  %s505_s1 = inlined_call_operand.vmem [shape: bf16[128,32], index: 1, kind: output, shape index: {}]  }
   0x1   :  { %v299_v0 = vld [vmem:[%s504_s0 + $0x10] sm:$0xff]  ;;  %v304_v1 = vld [vmem:[%s504_s0] sm:$0xff]  ;;  %v309_v2 = vld [vmem:[%s504_s0 + $0x18] sm:$0xff] }
   0x2   :  { %v26_v3 = vmul.f32 %v299_v0, %v299_v0  ;;  %v24_v4 = vmul.f32 %v304_v1, %v304_v1  ;;  %v27_v5 = vmul.f32 %v309_v2, %v309_v2  ;;  %v320_v6 = vld [vmem:[%s504_s0 + $0x8] sm:$0xff]  ;;  %v332_v9 = vld [vmem:[%s504_s0 + $0x20] sm:$0xff]  ;;  %v345_v16 = vld [vmem:[%s504_s0 + $0x38] sm:$0xff] }
   0x3   :  { %v25_v7 = vmul.f32 %v320_v6, %v320_v6  ;;  %v327_v8 = vld [vmem:[%s504_s0 + $0x28] sm:$0xff]  ;;  %v28_v15 = vmul.f32 %v332_v9, %v332_v9  ;;  %v350_v17 = vld [vmem:[%s504_s0 + $0x30] sm:$0xff]  ;;  %v31_v20 = vmul.f32 %v345_v16, %v345_v16  ;;  %v366_v23 = vld [vmem:[%s504_s0 + $0x40] sm:$0xff] }
   0x4   :  { %v47_v10 = vsel %vm40_vm0, %v26_v3, 0.0  ;;  %v41_v11 = vsel %vm40_vm0, %v24_v4, 0.0  ;;  %v50_v12 = vsel %vm40_vm0, %v27_v5, 0.0  ;;  %v29_v14 = vmul.f32 %v327_v8, %v327_v8  ;;  %v361_v22 = vld [vmem:[%s504_s0 + $0x48] sm:$0xff]  ;;  %v377_v28 = vld [vmem:[%s504_s0 + $0x58] sm:$0xff]  ;;  %v382_v29 = vld [vmem:[%s504_s0 + $0x50] sm:$0xff] }
   0x5   :  { %48 = vadd.xlane.f32.xlu1 %v47_v10  ;;  %42 = vadd.xlane.f32.xlu0 %v41_v11  ;;  %v44_v13 = vsel %vm40_vm0, %v25_v7, 0.0  ;;  %v53_v19 = vsel %vm40_vm0, %v28_v15, 0.0  ;;  %v30_v21 = vmul.f32 %v350_v17, %v350_v17  ;;  %v62_v24 = vsel %vm40_vm0, %v31_v20, 0.0  ;;  %v393_v34 = vld [vmem:[%s504_s0 + $0x68] sm:$0xff]  ;;  %v398_v35 = vld [vmem:[%s504_s0 + $0x60] sm:$0xff]  ;;  %v409_v40 = vld [vmem:[%s504_s0 + $0x78] sm:$0xff] }
   0x6   :  { %v56_v18 = vsel %vm40_vm0, %v29_v14, 0.0  ;;  %v33_v26 = vmul.f32 %v361_v22, %v361_v22  ;;  %v32_v27 = vmul.f32 %v366_v23, %v366_v23  ;;  %v35_v32 = vmul.f32 %v377_v28, %v377_v28  ;;  %v414_v41 = vld [vmem:[%s504_s0 + $0x70] sm:$0xff] }
   0x7   :  { %v59_v25 = vsel %vm40_vm0, %v30_v21, 0.0  ;;  %v34_v33 = vmul.f32 %v382_v29, %v382_v29  ;;  %v37_v38 = vmul.f32 %v393_v34, %v393_v34  ;;  %v36_v39 = vmul.f32 %v398_v35, %v398_v35 }
   0x8   :  { %v68_v30 = vsel %vm40_vm0, %v33_v26, 0.0  ;;  %v65_v31 = vsel %vm40_vm0, %v32_v27, 0.0  ;;  %v74_v36 = vsel %vm40_vm0, %v35_v32, 0.0  ;;  %v39_v44 = vmul.f32 %v409_v40, %v409_v40 }
   0x9   :  { %51 = vadd.xlane.f32.xlu1 %v50_v12  ;;  %45 = vadd.xlane.f32.xlu0 %v44_v13  ;;  %v71_v37 = vsel %vm40_vm0, %v34_v33, 0.0  ;;  %v80_v42 = vsel %vm40_vm0, %v37_v38, 0.0  ;;  %v77_v43 = vsel %vm40_vm0, %v36_v39, 0.0  ;;  %v38_v45 = vmul.f32 %v414_v41, %v414_v41 }
   0xa   :  { %v86_v46 = vsel %vm40_vm0, %v39_v44, 0.0 }
   0xb   :  { %v83_v47 = vsel %vm40_vm0, %v38_v45, 0.0 }
   0xd   :  { %57 = vadd.xlane.f32.xlu1 %v56_v18  ;;  %54 = vadd.xlane.f32.xlu0 %v53_v19 }
  0x11   :  { %63 = vadd.xlane.f32.xlu1 %v62_v24  ;;  %60 = vadd.xlane.f32.xlu0 %v59_v25 }
  0x15   :  { %69 = vadd.xlane.f32.xlu1 %v68_v30  ;;  %66 = vadd.xlane.f32.xlu0 %v65_v31 }
  0x19   :  { %75 = vadd.xlane.f32.xlu1 %v74_v36  ;;  %72 = vadd.xlane.f32.xlu0 %v71_v37 }
  0x1d   :  { %81 = vadd.xlane.f32.xlu1 %v80_v42  ;;  %78 = vadd.xlane.f32.xlu0 %v77_v43 }
  0x21   :  { %87 = vadd.xlane.f32.xlu1 %v86_v46  ;;  %84 = vadd.xlane.f32.xlu0 %v83_v47 }
  0x92   :  { %v49_v48 = vpop.xlane.xlu1 %48  ;;  %v43_v49 = vpop.xlane.xlu0 %42 }
  0x93   :  { %v91_v50 = vmax.f32 %v49_v48, 1e-24  ;;  %v89_v51 = vmax.f32 %v43_v49, 1e-24 }
  0x95   :  { %254 = vrsqrt.f32 %v91_v50 }
  0x96   :  { %256 = vrsqrt.f32 %v89_v51  ;;  %v52_v52 = vpop.xlane.xlu1 %51  ;;  %v46_v53 = vpop.xlane.xlu0 %45 }
  0x97   :  { %v92_v54 = vmax.f32 %v52_v52, 1e-24  ;;  %v90_v55 = vmax.f32 %v46_v53, 1e-24 }
  0x99   :  { %258 = vrsqrt.f32 %v92_v54 }
  0x9a   :  { %260 = vrsqrt.f32 %v90_v55  ;;  %v58_v56 = vpop.xlane.xlu1 %57  ;;  %v55_v57 = vpop.xlane.xlu0 %54 }
  0x9b   :  { %v94_v58 = vmax.f32 %v58_v56, 1e-24  ;;  %v93_v59 = vmax.f32 %v55_v57, 1e-24 }
  0x9d   :  { %262 = vrsqrt.f32 %v94_v58 }
  0x9e   :  { %264 = vrsqrt.f32 %v93_v59  ;;  %v64_v60 = vpop.xlane.xlu1 %63  ;;  %v61_v61 = vpop.xlane.xlu0 %60 }
  0x9f   :  { %v255_v62 = vpop.eup %254  ;;  %v96_v63 = vmax.f32 %v64_v60, 1e-24  ;;  %v95_v3 = vmax.f32 %v61_v61, 1e-24 }
  0xa0   :  { %v257_v4 = vpop.eup %256  ;;  %v123_v5 = vmul.f32 %v255_v62, %v299_v0 }
  0xa1   :  { %v121_v7 = vmul.f32 %v257_v4, %v304_v1  ;;  %266 = vrsqrt.f32 %v96_v63 }
  0xa2   :  { %v240_v10 = vpack.c.bf16 %v123_v5, %v123_v5  ;;  %268 = vrsqrt.f32 %v95_v3  ;;  %v70_v11 = vpop.xlane.xlu1 %69  ;;  %v67_v12 = vpop.xlane.xlu0 %66 }
  0xa3   :  { %v259_v13 = vpop.eup %258  ;;  %v238_v14 = vpack.c.bf16 %v121_v7, %v121_v7  ;;  %v98_v15 = vmax.f32 %v70_v11, 1e-24  ;;  %v97_v18 = vmax.f32 %v67_v12, 1e-24 }
  0xa4   :  { %v261_v19 = vpop.eup %260  ;;  %204 = vst.msk [vmem:[%s505_s1 + $0x8] sm:$0xf] %vm201_vm1, %v240_v10  ;;  %v124_v0 = vmul.f32 %v259_v13, %v309_v2 }
  0xa5   :  { %202 = vst.msk [vmem:[%s505_s1] sm:$0xf] %vm201_vm1, %v238_v14  ;;  %v122_v1 = vmul.f32 %v261_v19, %v320_v6  ;;  %270 = vrsqrt.f32 %v98_v15 }
  0xa6   :  { %v241_v20 = vpack.c.bf16 %v124_v0, %v124_v0  ;;  %272 = vrsqrt.f32 %v97_v18  ;;  %v76_v21 = vpop.xlane.xlu1 %75  ;;  %v73_v24 = vpop.xlane.xlu0 %72 }
  0xa7   :  { %v263_v25 = vpop.eup %262  ;;  %v239_v26 = vpack.c.bf16 %v122_v1, %v122_v1  ;;  %v100_v27 = vmax.f32 %v76_v21, 1e-24  ;;  %v99_v30 = vmax.f32 %v73_v24, 1e-24 }
  0xa8   :  { %v265_v31 = vpop.eup %264  ;;  %205 = vst.msk [vmem:[%s505_s1 + $0xc] sm:$0xf] %vm201_vm1, %v241_v20  ;;  %v126_v2 = vmul.f32 %v263_v25, %v327_v8 }
  0xa9   :  { %203 = vst.msk [vmem:[%s505_s1 + $0x4] sm:$0xf] %vm201_vm1, %v239_v26  ;;  %v125_v6 = vmul.f32 %v265_v31, %v332_v9  ;;  %274 = vrsqrt.f32 %v100_v27 }
  0xaa   :  { %v243_v32 = vpack.c.bf16 %v126_v2, %v126_v2  ;;  %276 = vrsqrt.f32 %v99_v30  ;;  %v82_v33 = vpop.xlane.xlu1 %81  ;;  %v79_v36 = vpop.xlane.xlu0 %78 }
  0xab   :  { %v267_v37 = vpop.eup %266  ;;  %v242_v38 = vpack.c.bf16 %v125_v6, %v125_v6  ;;  %v102_v39 = vmax.f32 %v82_v33, 1e-24  ;;  %v101_v42 = vmax.f32 %v79_v36, 1e-24 }
  0xac   :  { %v269_v43 = vpop.eup %268  ;;  %207 = vst.msk [vmem:[%s505_s1 + $0x14] sm:$0xf] %vm201_vm1, %v243_v32  ;;  %v128_v8 = vmul.f32 %v267_v37, %v345_v16 }
  0xad   :  { %206 = vst.msk [vmem:[%s505_s1 + $0x10] sm:$0xf] %vm201_vm1, %v242_v38  ;;  %v127_v9 = vmul.f32 %v269_v43, %v350_v17  ;;  %278 = vrsqrt.f32 %v102_v39 }
  0xae   :  { %v245_v44 = vpack.c.bf16 %v128_v8, %v128_v8  ;;  %280 = vrsqrt.f32 %v101_v42  ;;  %v88_v45 = vpop.xlane.xlu1 %87  ;;  %v85_v46 = vpop.xlane.xlu0 %84 }
  0xaf   :  { %v271_v47 = vpop.eup %270  ;;  %v244_v48 = vpack.c.bf16 %v127_v9, %v127_v9  ;;  %v104_v49 = vmax.f32 %v88_v45, 1e-24  ;;  %v103_v50 = vmax.f32 %v85_v46, 1e-24 }
  0xb0   :  { %v273_v51 = vpop.eup %272  ;;  %209 = vst.msk [vmem:[%s505_s1 + $0x1c] sm:$0xf] %vm201_vm1, %v245_v44  ;;  %v130_v16 = vmul.f32 %v271_v47, %v361_v22 }
  0xb1   :  { %208 = vst.msk [vmem:[%s505_s1 + $0x18] sm:$0xf] %vm201_vm1, %v244_v48  ;;  %v129_v17 = vmul.f32 %v273_v51, %v366_v23  ;;  %282 = vrsqrt.f32 %v104_v49 }
  0xb2   :  { %v247_v52 = vpack.c.bf16 %v130_v16, %v130_v16  ;;  %284 = vrsqrt.f32 %v103_v50 }
  0xb3   :  { %v275_v53 = vpop.eup %274  ;;  %v246_v54 = vpack.c.bf16 %v129_v17, %v129_v17 }
  0xb4   :  { %v277_v55 = vpop.eup %276  ;;  %211 = vst.msk [vmem:[%s505_s1 + $0x24] sm:$0xf] %vm201_vm1, %v247_v52  ;;  %v132_v22 = vmul.f32 %v275_v53, %v377_v28 }
  0xb5   :  { %210 = vst.msk [vmem:[%s505_s1 + $0x20] sm:$0xf] %vm201_vm1, %v246_v54  ;;  %v131_v23 = vmul.f32 %v277_v55, %v382_v29 }
  0xb6   :  { %v249_v56 = vpack.c.bf16 %v132_v22, %v132_v22 }
  0xb7   :  { %v279_v57 = vpop.eup %278  ;;  %v248_v58 = vpack.c.bf16 %v131_v23, %v131_v23 }
  0xb8   :  { %v281_v59 = vpop.eup %280  ;;  %213 = vst.msk [vmem:[%s505_s1 + $0x2c] sm:$0xf] %vm201_vm1, %v249_v56  ;;  %v134_v60 = vmul.f32 %v279_v57, %v393_v34 }
  0xb9   :  { %212 = vst.msk [vmem:[%s505_s1 + $0x28] sm:$0xf] %vm201_vm1, %v248_v58  ;;  %v133_v28 = vmul.f32 %v281_v59, %v398_v35 }
  0xba   :  { %v251_v61 = vpack.c.bf16 %v134_v60, %v134_v60 }
  0xbb   :  { %v283_v29 = vpop.eup %282  ;;  %v250_v62 = vpack.c.bf16 %v133_v28, %v133_v28 }
  0xbc   :  { %v285_v63 = vpop.eup %284  ;;  %215 = vst.msk [vmem:[%s505_s1 + $0x34] sm:$0xf] %vm201_vm1, %v251_v61  ;;  %v136_v3 = vmul.f32 %v283_v29, %v409_v40 }
  0xbd   :  { %214 = vst.msk [vmem:[%s505_s1 + $0x30] sm:$0xf] %vm201_vm1, %v250_v62  ;;  %v135_v34 = vmul.f32 %v285_v63, %v414_v41 }
  0xbe   :  { %v253_v4 = vpack.c.bf16 %v136_v3, %v136_v3 }
  0xbf   :  { %v252_v35 = vpack.c.bf16 %v135_v34, %v135_v34 }
  0xc0   :  { %217 = vst.msk [vmem:[%s505_s1 + $0x3c] sm:$0xf] %vm201_vm1, %v253_v4 }
  0xc1   :  { %216 = vst.msk [vmem:[%s505_s1 + $0x38] sm:$0xf] %vm201_vm1, %v252_v35 }

// kernel: cgcl_forward.17
= control target key start
LH: loop header
LB: loop body
LE: loop exit
PB: predicated region body
PF: predicated region fallthrough
CT: control target
= control target key end

     0   :  { %vm21_vm0 = vcmask 261120   ;;  %v232_v1 = vmov 0.0   ;;  %vm233_vm1 = vmmov 0   ;;  %vm30_vm2 = vcmask 257024   ;;  %s296_s0 = inlined_call_operand.vmem [shape: f32[8,32], index: 0, kind: input, shape index: {}]   ;;  %s297_s2 = inlined_call_operand.vmem [shape: bf16[80,32], index: 2, kind: input, shape index: {}]   ;;  %s298_s1 = inlined_call_operand.vmem [shape: bf16[8,32], index: 1, kind: input, shape index: {}]   ;;  %s299_s3 = inlined_call_operand.vmem [shape: f32[8,1], index: 3, kind: output, shape index: {}]  }
   0x1   :  { %v19_v0 = vld [vmem:[%s296_s0] sm:$0xff]  ;;  %195 = vmatprep.subr.bf16.mxu0 %v232_v1  ;;  %v216_v6 = vld [vmem:[%s297_s2 + $0x8] sm:$0xff]   ;;  %v217_v8 = vld [vmem:[%s297_s2 + $0x10] sm:$0xff]   ;;  %205 = vmatprep.mubr.msk.bf16.mxu0 %vm233_vm1, %v232_v1  ;;  %vm38_vm3 = vcmask 7168   ;;  %v234_v21 = vmov -inf   ;;  %vm138_vm4 = vcmask 654336  }
   0x2   :  { %v20_v2 = vmul.f32 %v19_v0, %v19_v0  ;;  %v215_v3 = vld [vmem:[%s297_s2] sm:$0xff]   ;;  %v86_v7 = vsel %vm21_vm0, %v216_v6, 0  ;;  %v89_v9 = vsel %vm21_vm0, %v217_v8, 0  ;;  %v218_v10 = vld [vmem:[%s297_s2 + $0x18] sm:$0xff]   ;;  %40 = vst.msk [vmem:[#allocation4] sm:$0xff] %vm38_vm3, %v234_v21  ;;  %41 = vst.msk [vmem:[#allocation5] sm:$0xff] %vm38_vm3, %v232_v1 }
   0x3   :  { %v83_v5 = vsel %vm21_vm0, %v215_v3, 0  ;;  %v92_v11 = vsel %vm21_vm0, %v218_v10, 0  ;;  %v219_v12 = vld [vmem:[%s297_s2 + $0x20] sm:$0xff]   ;;  %v235_v27 = vmov 0  }
   0x4   :  { %v22_v4 = vsel %vm21_vm0, %v20_v2, 0.0  ;;  %196 = vmatpush3.bf16.xpose.msra.mxu0 %v83_v5  ;;  %v95_v13 = vsel %vm21_vm0, %v219_v12, 0  ;;  %213 = vset.pattern.permute.xlu1 %v235_v27  ;;  %v32_v32 = vld [vmem:[%s298_s1] sm:$0xf] }
   0x5   :  { %23 = vadd.xlane.f32.xlu0 %v22_v4  ;;  %197 = vmatprep.subr.bf16.mxu0 %v232_v1  ;;  %v33_v33 = vunpack.c.l.bf16 %v32_v32 }
   0x6   :  { %214 = vset.pattern.permute.xlu0 %v235_v27 }
   0x9   :  { %v137_v28 = vld [vmem:[#allocation4] sm:$0xff]  ;;  %v146_v44 = vld [vmem:[#allocation5] sm:$0xff] }
   0xc   :  { %198 = vmatpush3.bf16.xpose.msra.mxu0 %v86_v7 }
   0xd   :  { %199 = vmatprep.subr.bf16.mxu0 %v232_v1 }
  0x14   :  { %200 = vmatpush3.bf16.xpose.msra.mxu0 %v89_v9 }
  0x15   :  { %201 = vmatprep.subr.bf16.mxu0 %v232_v1 }
  0x1c   :  { %202 = vmatpush3.bf16.xpose.msra.mxu0 %v92_v11 }
  0x1d   :  { %203 = vmatprep.subr.bf16.mxu0 %v232_v1 }
  0x24   :  { %204 = vmatpush3.bf16.xpose.msra.mxu0 %v95_v13 }
  0x92   :  { %v24_v14 = vpop.xlane.xlu0 %23 }
  0x93   :  { %v25_v15 = vmax.f32 %v24_v14, 1e-24 }
  0x95   :  { %220 = vrsqrt.f32 %v25_v15 }
  0x9f   :  { %v221_v16 = vpop.eup %220 }
  0xa0   :  { %v27_v17 = vmul.f32 %v221_v16, %v19_v0 }
  0xa2   :  { %v28_v18 = vmul.f32 5.0, %v27_v17 }
  0xa4   :  { %v29_v19 = vpack.c.bf16 %v28_v18, %v28_v18  ;;  %v34_v34 = vmul.f32 %v33_v33, %v28_v18 }
  0xa6   :  { %31 = vst.msk [vmem:[#allocation2] sm:$0xf] %vm30_vm2, %v29_v19  ;;  %v35_v35 = vsel %vm21_vm0, %v34_v34, 0.0 }
  0xad   :  { %v42_v20 = vld [vmem:[#allocation2] sm:$0xf] }
  0xae   :  { %206 = vmatmul.mubr.msk.bf16.vlgmr.msra.gmra.mrb[0].mxu0 %vm21_vm0, %v42_v20 }
 0x181   :  { %v131_v22 = vpop.f32.mrb[0].mxu0 }
 0x182   :  { %v207_v23 = vpop.f32.mrb[1].mxu0  ;;  %v139_v24 = vsel %vm138_vm4, %v131_v22, -inf }
 0x183   :  { %140 = vmax.xlane.f32.xlu0 %v139_v24  ;;  %v134_v25 = vpop.f32.mrb[2].mxu0 }
 0x184   :  { %v208_v26 = vpop.f32.mrb[3].mxu0 }
 0x210   :  { %v141_v29 = vpop.xlane.xlu0 %140 }
 0x211   :  { %v142_v30 = vmax.f32 %v137_v28, %v141_v29 }
 0x213   :  { %v143_v31 = vsub.f32 %v137_v28, %v142_v30  ;;  %162 = vst.msk [vmem:[#allocation4] sm:$0xff] %vm38_vm3, %v142_v30  ;;  %150 = vperm.xlu1 %213, %v142_v30  }
 0x215   :  { %v144_v42 = vmul.f32 1.442695, %v143_v31 }
 0x21a   :  { %v167_v48 = vld [vmem:[#allocation4] sm:$0xff] }
 0x237   :  { %36 = vadd.xlane.f32.xlu1 %v35_v35 }
 0x292   :  { %v151_v36 = vpop.permute.xlu1 %150 }
 0x293   :  { %v153_v37 = vsub.f32 %v131_v22, %v151_v36 }
 0x295   :  { %v154_v38 = vmul.f32 1.442695, %v153_v37 }
 0x297   :  { %222 = vpow2.f32 %v154_v38 }
 0x298   :  { %224 = vpow2.f32 %v144_v42 }
 0x2a1   :  { %v223_v39 = vpop.eup %222 }
 0x2a2   :  { %v156_v40 = vsel %vm138_vm4, %v223_v39, 0.0  ;;  %v225_v43 = vpop.eup %224 }
 0x2a3   :  { %157 = vadd.xlane.f32.xlu0 %v156_v40  ;;  %v147_v46 = vmul.f32 %v225_v43, %v146_v44 }
 0x2c4   :  { %v37_v41 = vpop.xlane.xlu1 %36 }
 0x2c5   :  { %39 = vst.msk [vmem:[#allocation3] sm:$0xff] %vm38_vm3, %v37_v41 }
 0x2cc   :  { %v166_v45 = vld [vmem:[#allocation3] sm:$0xff] }
 0x2cd   :  { %v168_v50 = vsub.f32 %v166_v45, %v167_v48 }
 0x2cf   :  { %v169_v51 = vmul.f32 1.442695, %v168_v50 }
 0x2d1   :  { %226 = vpow2.f32 %v169_v51 }
 0x2db   :  { %v227_v53 = vpop.eup %226 }
 0x330   :  { %v158_v47 = vpop.xlane.xlu0 %157 }
 0x331   :  { %v159_v49 = vadd.f32 %v158_v47, %v147_v46 }
 0x333   :  { %161 = vst.msk [vmem:[#allocation5] sm:$0xff] %vm38_vm3, %v159_v49 }
 0x33a   :  { %v171_v52 = vld [vmem:[#allocation5] sm:$0xff] }
 0x33b   :  { %228 = vrcp.f32 %v171_v52 }
 0x345   :  { %v229_v54 = vpop.eup %228 }
 0x346   :  { %v173_v55 = vmul.f32 %v229_v54, %v227_v53 }
 0x348   :  { %v174_v56 = vadd.f32 1e-07, %v173_v55 }
 0x34a   :  { %230 = vlog2.f32 %v174_v56 }
 0x354   :  { %v231_v57 = vpop.eup %230 }
 0x355   :  { %v176_v58 = vmul.f32 0.6931472, %v231_v57 }
 0x357   :  { %v177_v59 = vsub.f32 0.0, %v176_v58 }
 0x359   :  { %178 = vst.msk [vmem:[%s299_s3] sm:$0xff] %vm38_vm3, %v177_v59 }

// kernel: cgcl_forward.9
= control target key start
LH: loop header
LB: loop body
LE: loop exit
PB: predicated region body
PF: predicated region fallthrough
CT: control target
= control target key end

     0   :  { %vm21_vm0 = vcmask 261120   ;;  %v516_v1 = vmov 0.0   ;;  %s798_s1 = inlined_call_operand.vmem [shape: bf16[128,32], index: 1, kind: input, shape index: {}]   ;;  %s799_s0 = inlined_call_operand.vmem [shape: bf16[128,128], index: 0, kind: input, shape index: {}]   ;;  %s800_s2 = inlined_call_operand.vmem [shape: f32[128,32], index: 2, kind: input, shape index: {}]   ;;  %s801_s3 = inlined_call_operand.vmem [shape: f32[128,32], index: 3, kind: output, shape index: {0}]   ;;  %s802_s4 = inlined_call_operand.vmem [shape: f32[128,32], index: 4, kind: output, shape index: {1}]  }
   0x1   :  { %v500_v0 = vld [vmem:[%s798_s1] sm:$0xff]   ;;  %24 = vst.msk [vmem:[#allocation2 + $0x10] sm:$0xff] %vm21_vm0, %v516_v1  ;;  %22 = vst.msk [vmem:[#allocation2] sm:$0xff] %vm21_vm0, %v516_v1  ;;  %v501_v2 = vld [vmem:[%s798_s1 + $0x8] sm:$0xff]  }
   0x2   :  { %23 = vst.msk [vmem:[#allocation2 + $0x8] sm:$0xff] %vm21_vm0, %v516_v1  ;;  %25 = vst.msk [vmem:[#allocation2 + $0x18] sm:$0xff] %vm21_vm0, %v516_v1  ;;  %451 = vmatprep.subr.bf16.mxu0 %v500_v0  ;;  %483 = vmatprep.subr.bf16.mxu1 %v500_v0  ;;  %v502_v3 = vld [vmem:[%s798_s1 + $0x10] sm:$0xff]   ;;  %v503_v4 = vld [vmem:[%s798_s1 + $0x18] sm:$0xff]  }
   0x3   :  { %26 = vst.msk [vmem:[#allocation2 + $0x20] sm:$0xff] %vm21_vm0, %v516_v1  ;;  %27 = vst.msk [vmem:[#allocation2 + $0x28] sm:$0xff] %vm21_vm0, %v516_v1  ;;  %452 = vmatpush3.bf16.msra.mxu0 %v500_v0  ;;  %491 = vmatpush3.bf16.msra.mxu1 %v500_v0  ;;  %v508_v5 = vld [vmem:[%s799_s0] sm:$0xff]   ;;  %v505_v8 = vld [vmem:[%s798_s1 + $0x28] sm:$0xff]  }
   0x4   :  { %28 = vst.msk [vmem:[#allocation2 + $0x30] sm:$0xff] %vm21_vm0, %v516_v1  ;;  %29 = vst.msk [vmem:[#allocation2 + $0x38] sm:$0xff] %vm21_vm0, %v516_v1  ;;  %453 = vmatprep.subr.bf16.mxu0 %v501_v2  ;;  %484 = vmatprep.subr.bf16.mxu1 %v501_v2  ;;  %v509_v6 = vld [vmem:[%s799_s0 + $0x20] sm:$0xff]   ;;  %v506_v9 = vld [vmem:[%s798_s1 + $0x30] sm:$0xff]  }
   0x5   :  { %30 = vst.msk [vmem:[#allocation2 + $0x40] sm:$0xff] %vm21_vm0, %v516_v1  ;;  %31 = vst.msk [vmem:[#allocation2 + $0x48] sm:$0xff] %vm21_vm0, %v516_v1  ;;  %467 = vmatprep.mubr.bf16.mxu0 %v508_v5  ;;  %v504_v7 = vld [vmem:[%s798_s1 + $0x20] sm:$0xff]   ;;  %475 = vmatprep.mubr.bf16.mxu1 %v509_v6  ;;  %v507_v10 = vld [vmem:[%s798_s1 + $0x38] sm:$0xff]  }
   0x6   :  { %32 = vst.msk [vmem:[#allocation2 + $0x50] sm:$0xff] %vm21_vm0, %v516_v1  ;;  %33 = vst.msk [vmem:[#allocation2 + $0x58] sm:$0xff] %vm21_vm0, %v516_v1  ;;  %v510_v11 = vld [vmem:[%s799_s0 + $0x8] sm:$0xff]   ;;  %v512_v13 = vld [vmem:[%s799_s0 + $0x10] sm:$0xff]  }
   0x7   :  { %34 = vst.msk [vmem:[#allocation2 + $0x60] sm:$0xff] %vm21_vm0, %v516_v1  ;;  %35 = vst.msk [vmem:[#allocation2 + $0x68] sm:$0xff] %vm21_vm0, %v516_v1  ;;  %454 = vmatpush3.bf16.msra.mxu0 %v501_v2  ;;  %492 = vmatpush3.bf16.msra.mxu1 %v501_v2  ;;  %v511_v12 = vld [vmem:[%s799_s0 + $0x28] sm:$0xff]   ;;  %v513_v14 = vld [vmem:[%s799_s0 + $0x30] sm:$0xff]  }
   0x8   :  { %36 = vst.msk [vmem:[#allocation2 + $0x70] sm:$0xff] %vm21_vm0, %v516_v1  ;;  %37 = vst.msk [vmem:[#allocation2 + $0x78] sm:$0xff] %vm21_vm0, %v516_v1  ;;  %455 = vmatprep.subr.bf16.mxu0 %v502_v3  ;;  %485 = vmatprep.subr.bf16.mxu1 %v502_v3  ;;  %v514_v15 = vld [vmem:[%s799_s0 + $0x18] sm:$0xff]   ;;  %v40_v17 = vld [vmem:[#allocation2 + $0x10] sm:$0xff] }
   0x9   :  { %v515_v16 = vld [vmem:[%s799_s0 + $0x38] sm:$0xff]   ;;  %v41_v23 = vld [vmem:[#allocation2 + $0x18] sm:$0xff]  ;;  %v39_v29 = vld [vmem:[#allocation2 + $0x8] sm:$0xff] }
   0xa   :  { %v38_v19 = vld [vmem:[#allocation2] sm:$0xff]  ;;  %v349_v43 = vld [vmem:[%s800_s2 + $0x10] sm:$0xff]  ;;  %v347_v47 = vld [vmem:[%s800_s2] sm:$0xff] }
   0xb   :  { %456 = vmatpush3.bf16.msra.mxu0 %v502_v3  ;;  %493 = vmatpush3.bf16.msra.mxu1 %v502_v3  ;;  %v44_v41 = vld [vmem:[#allocation2 + $0x30] sm:$0xff]  ;;  %v42_v44 = vld [vmem:[#allocation2 + $0x20] sm:$0xff]  ;;  %v357_v46 = vld [vmem:[%s800_s2 + $0x50] sm:$0xff] }
   0xc   :  { %457 = vmatprep.subr.bf16.mxu0 %v503_v4  ;;  %486 = vmatprep.subr.bf16.mxu1 %v503_v4  ;;  %v46_v20 = vld [vmem:[#allocation2 + $0x40] sm:$0xff]  ;;  %v47_v30 = vld [vmem:[#allocation2 + $0x48] sm:$0xff]  ;;  %v45_v48 = vld [vmem:[#allocation2 + $0x38] sm:$0xff] }
   0xd   :  { %v48_v18 = vld [vmem:[#allocation2 + $0x50] sm:$0xff]  ;;  %v49_v24 = vld [vmem:[#allocation2 + $0x58] sm:$0xff]  ;;  %v355_v49 = vld [vmem:[%s800_s2 + $0x40] sm:$0xff] }
   0xe   :  { %v50_v45 = vld [vmem:[#allocation2 + $0x60] sm:$0xff]  ;;  %v43_v59 = vld [vmem:[#allocation2 + $0x28] sm:$0xff]  ;;  %v348_v63 = vld [vmem:[%s800_s2 + $0x8] sm:$0xff] }
   0xf   :  { %458 = vmatpush3.bf16.msra.mxu0 %v503_v4  ;;  %494 = vmatpush3.bf16.msra.mxu1 %v503_v4  ;;  %v52_v42 = vld [vmem:[#allocation2 + $0x70] sm:$0xff]  ;;  %v350_v50 = vld [vmem:[%s800_s2 + $0x18] sm:$0xff]  ;;  %v53_v53 = vld [vmem:[#allocation2 + $0x78] sm:$0xff] }
  0x10   :  { %459 = vmatprep.subr.bf16.mxu0 %v504_v7  ;;  %487 = vmatprep.subr.bf16.mxu1 %v504_v7  ;;  %v358_v54 = vld [vmem:[%s800_s2 + $0x58] sm:$0xff]  ;;  %v51_v60 = vld [vmem:[#allocation2 + $0x68] sm:$0xff] }
  0x13   :  { %460 = vmatpush3.bf16.msra.mxu0 %v504_v7  ;;  %495 = vmatpush3.bf16.msra.mxu1 %v504_v7 }
  0x14   :  { %461 = vmatprep.subr.bf16.mxu0 %v505_v8  ;;  %488 = vmatprep.subr.bf16.mxu1 %v505_v8 }
  0x17   :  { %462 = vmatpush3.bf16.msra.mxu0 %v505_v8  ;;  %496 = vmatpush3.bf16.msra.mxu1 %v505_v8  ;;  %v356_v8 = vld [vmem:[%s800_s2 + $0x48] sm:$0xff] }
  0x18   :  { %463 = vmatprep.subr.bf16.mxu0 %v506_v9  ;;  %489 = vmatprep.subr.bf16.mxu1 %v506_v9 }
  0x1b   :  { %464 = vmatpush3.bf16.msra.mxu0 %v506_v9  ;;  %497 = vmatpush3.bf16.msra.mxu1 %v506_v9 }
  0x1c   :  { %465 = vmatprep.subr.bf16.mxu0 %v507_v10  ;;  %490 = vmatprep.subr.bf16.mxu1 %v507_v10 }
  0x1f   :  { %466 = vmatpush3.bf16.msra.mxu0 %v507_v10  ;;  %498 = vmatpush3.bf16.msra.mxu1 %v507_v10 }
  0x22   :  { %468 = vmatmul.mubr.bf16.vlgmr.msra.gmra.mrb[0].mxu0 %v510_v11  ;;  %476 = vmatmul.mubr.bf16.vlgmr.msra.gmra.mrb[0].mxu1 %v511_v12 }
  0x23   :  { %471 = vmatprep.mubr.bf16.mxu0 %v512_v13  ;;  %479 = vmatprep.mubr.bf16.mxu1 %v513_v14 }
  0x2a   :  { %472 = vmatmul.mubr.bf16.gmra.mrb[4].mxu0 %v514_v15  ;;  %480 = vmatmul.mubr.bf16.gmra.mrb[4].mxu1 %v515_v16 }
  0xf5   :  { %v469_v21 = vpop.f32.mrb[0].mxu0  ;;  %v477_v22 = vpop.f32.mrb[0].mxu1 }
  0xf6   :  { %v281_v25 = vadd.f32 %v469_v21, %v40_v17  ;;  %v289_v26 = vadd.f32 %v477_v22, %v48_v18  ;;  %v216_v27 = vpop.f32.mrb[1].mxu0  ;;  %v248_v28 = vpop.f32.mrb[1].mxu1 }
  0xf7   :  { %v279_v31 = vadd.f32 %v216_v27, %v38_v19  ;;  %v287_v32 = vadd.f32 %v248_v28, %v46_v20  ;;  %v470_v33 = vpop.f32.mrb[2].mxu0  ;;  %v478_v34 = vpop.f32.mrb[2].mxu1  ;;  %v351_v27 = vld [vmem:[%s800_s2 + $0x20] sm:$0xff] }
  0xf8   :  { %298 = vst.msk [vmem:[#allocation2 + $0x10] sm:$0xff] %vm21_vm0, %v281_v25  ;;  %306 = vst.msk [vmem:[#allocation2 + $0x50] sm:$0xff] %vm21_vm0, %v289_v26  ;;  %v282_v35 = vadd.f32 %v470_v33, %v41_v23  ;;  %v290_v36 = vadd.f32 %v478_v34, %v49_v24  ;;  %v219_v37 = vpop.f32.mrb[3].mxu0  ;;  %v251_v38 = vpop.f32.mrb[3].mxu1  ;;  %v353_v25 = vld [vmem:[%s800_s2 + $0x30] sm:$0xff]  ;;  %v359_v28 = vld [vmem:[%s800_s2 + $0x60] sm:$0xff] }
  0xf9   :  { %296 = vst.msk [vmem:[#allocation2] sm:$0xff] %vm21_vm0, %v279_v31  ;;  %304 = vst.msk [vmem:[#allocation2 + $0x40] sm:$0xff] %vm21_vm0, %v287_v32  ;;  %v280_v39 = vadd.f32 %v219_v37, %v39_v29  ;;  %v288_v40 = vadd.f32 %v251_v38, %v47_v30  ;;  %v361_v26 = vld [vmem:[%s800_s2 + $0x70] sm:$0xff]  ;;  %v354_v29 = vld [vmem:[%s800_s2 + $0x38] sm:$0xff] }
  0xfa   :  { %299 = vst.msk [vmem:[#allocation2 + $0x18] sm:$0xff] %vm21_vm0, %v282_v35  ;;  %307 = vst.msk [vmem:[#allocation2 + $0x58] sm:$0xff] %vm21_vm0, %v290_v36  ;;  %v362_v30 = vld [vmem:[%s800_s2 + $0x78] sm:$0xff]  ;;  %v352_v33 = vld [vmem:[%s800_s2 + $0x28] sm:$0xff] }
  0xfb   :  { %297 = vst.msk [vmem:[#allocation2 + $0x8] sm:$0xff] %vm21_vm0, %v280_v39  ;;  %305 = vst.msk [vmem:[#allocation2 + $0x48] sm:$0xff] %vm21_vm0, %v288_v40  ;;  %v360_v38 = vld [vmem:[%s800_s2 + $0x68] sm:$0xff] }
  0xfd   :  { %v473_v51 = vpop.f32.mrb[4].mxu0  ;;  %v481_v52 = vpop.f32.mrb[4].mxu1 }
  0xfe   :  { %v285_v55 = vadd.f32 %v473_v51, %v44_v41  ;;  %v293_v56 = vadd.f32 %v481_v52, %v52_v42  ;;  %v232_v57 = vpop.f32.mrb[5].mxu0  ;;  %v264_v58 = vpop.f32.mrb[5].mxu1 }
  0xff   :  { %v317_v61 = vld [vmem:[#allocation2 + $0x10] sm:$0xff]  ;;  %v283_v0 = vadd.f32 %v232_v57, %v42_v44  ;;  %v291_v1 = vadd.f32 %v264_v58, %v50_v45  ;;  %v474_v2 = vpop.f32.mrb[6].mxu0  ;;  %v482_v3 = vpop.f32.mrb[6].mxu1 }
 0x100   :  { %v325_v62 = vld [vmem:[#allocation2 + $0x50] sm:$0xff]  ;;  %333 = vst.msk [vmem:[%s801_s3 + $0x10] sm:$0xff] %vm21_vm0, %v317_v61  ;;  %v381_v4 = vadd.f32 %v349_v43, %v317_v61  ;;  %v315_v6 = vld [vmem:[#allocation2] sm:$0xff]  ;;  %302 = vst.msk [vmem:[#allocation2 + $0x30] sm:$0xff] %vm21_vm0, %v285_v55  ;;  %v286_v9 = vadd.f32 %v474_v2, %v45_v48  ;;  %v294_v10 = vadd.f32 %v482_v3, %v53_v53  ;;  %v235_v11 = vpop.f32.mrb[7].mxu0  ;;  %v267_v12 = vpop.f32.mrb[7].mxu1 }
 0x101   :  { %341 = vst.msk [vmem:[%s801_s3 + $0x50] sm:$0xff] %vm21_vm0, %v325_v62  ;;  %v389_v5 = vadd.f32 %v357_v46, %v325_v62  ;;  %v323_v7 = vld [vmem:[#allocation2 + $0x40] sm:$0xff]  ;;  %310 = vst.msk [vmem:[#allocation2 + $0x70] sm:$0xff] %vm21_vm0, %v293_v56  ;;  %v379_v13 = vadd.f32 %v347_v47, %v315_v6  ;;  %v318_v15 = vld [vmem:[#allocation2 + $0x18] sm:$0xff]  ;;  %v284_v17 = vadd.f32 %v235_v11, %v43_v59 }
 0x102   :  { %331 = vst.msk [vmem:[%s801_s3] sm:$0xff] %vm21_vm0, %v315_v6  ;;  %339 = vst.msk [vmem:[%s801_s3 + $0x40] sm:$0xff] %vm21_vm0, %v323_v7  ;;  %v387_v14 = vadd.f32 %v355_v49, %v323_v7  ;;  %v326_v16 = vld [vmem:[#allocation2 + $0x58] sm:$0xff]  ;;  %v292_v18 = vadd.f32 %v267_v12, %v51_v60  ;;  %v382_v19 = vadd.f32 %v350_v50, %v318_v15  ;;  %v316_v21 = vld [vmem:[#allocation2 + $0x8] sm:$0xff] }
 0x103   :  { %300 = vst.msk [vmem:[#allocation2 + $0x20] sm:$0xff] %vm21_vm0, %v283_v0  ;;  %308 = vst.msk [vmem:[#allocation2 + $0x60] sm:$0xff] %vm21_vm0, %v291_v1  ;;  %v390_v20 = vadd.f32 %v358_v54, %v326_v16  ;;  %v324_v22 = vld [vmem:[#allocation2 + $0x48] sm:$0xff]  ;;  %v380_v23 = vadd.f32 %v348_v63, %v316_v21 }
 0x104   :  { %397 = vst.msk [vmem:[%s802_s4 + $0x10] sm:$0xff] %vm21_vm0, %v381_v4  ;;  %405 = vst.msk [vmem:[%s802_s4 + $0x50] sm:$0xff] %vm21_vm0, %v389_v5  ;;  %v388_v24 = vadd.f32 %v356_v8, %v324_v22 }
 0x105   :  { %334 = vst.msk [vmem:[%s801_s3 + $0x18] sm:$0xff] %vm21_vm0, %v318_v15  ;;  %342 = vst.msk [vmem:[%s801_s3 + $0x58] sm:$0xff] %vm21_vm0, %v326_v16 }
 0x106   :  { %303 = vst.msk [vmem:[#allocation2 + $0x38] sm:$0xff] %vm21_vm0, %v286_v9  ;;  %311 = vst.msk [vmem:[#allocation2 + $0x78] sm:$0xff] %vm21_vm0, %v294_v10 }
 0x107   :  { %395 = vst.msk [vmem:[%s802_s4] sm:$0xff] %vm21_vm0, %v379_v13  ;;  %403 = vst.msk [vmem:[%s802_s4 + $0x40] sm:$0xff] %vm21_vm0, %v387_v14  ;;  %v321_v31 = vld [vmem:[#allocation2 + $0x30] sm:$0xff] }
 0x108   :  { %332 = vst.msk [vmem:[%s801_s3 + $0x8] sm:$0xff] %vm21_vm0, %v316_v21  ;;  %340 = vst.msk [vmem:[%s801_s3 + $0x48] sm:$0xff] %vm21_vm0, %v324_v22  ;;  %v329_v32 = vld [vmem:[#allocation2 + $0x70] sm:$0xff]  ;;  %v385_v34 = vadd.f32 %v353_v25, %v321_v31 }
 0x109   :  { %301 = vst.msk [vmem:[#allocation2 + $0x28] sm:$0xff] %vm21_vm0, %v284_v17  ;;  %309 = vst.msk [vmem:[#allocation2 + $0x68] sm:$0xff] %vm21_vm0, %v292_v18  ;;  %v393_v35 = vadd.f32 %v361_v26, %v329_v32 }
 0x10a   :  { %398 = vst.msk [vmem:[%s802_s4 + $0x18] sm:$0xff] %vm21_vm0, %v382_v19  ;;  %406 = vst.msk [vmem:[%s802_s4 + $0x58] sm:$0xff] %vm21_vm0, %v390_v20  ;;  %v319_v36 = vld [vmem:[#allocation2 + $0x20] sm:$0xff] }
 0x10b   :  { %396 = vst.msk [vmem:[%s802_s4 + $0x8] sm:$0xff] %vm21_vm0, %v380_v23  ;;  %404 = vst.msk [vmem:[%s802_s4 + $0x48] sm:$0xff] %vm21_vm0, %v388_v24  ;;  %v327_v37 = vld [vmem:[#allocation2 + $0x60] sm:$0xff]  ;;  %v383_v39 = vadd.f32 %v351_v27, %v319_v36 }
 0x10c   :  { %337 = vst.msk [vmem:[%s801_s3 + $0x30] sm:$0xff] %vm21_vm0, %v321_v31  ;;  %345 = vst.msk [vmem:[%s801_s3 + $0x70] sm:$0xff] %vm21_vm0, %v329_v32  ;;  %v391_v40 = vadd.f32 %v359_v28, %v327_v37 }
 0x10d   :  { %335 = vst.msk [vmem:[%s801_s3 + $0x20] sm:$0xff] %vm21_vm0, %v319_v36  ;;  %343 = vst.msk [vmem:[%s801_s3 + $0x60] sm:$0xff] %vm21_vm0, %v327_v37  ;;  %v322_v41 = vld [vmem:[#allocation2 + $0x38] sm:$0xff] }
 0x10e   :  { %v330_v42 = vld [vmem:[#allocation2 + $0x78] sm:$0xff]  ;;  %401 = vst.msk [vmem:[%s802_s4 + $0x30] sm:$0xff] %vm21_vm0, %v385_v34  ;;  %409 = vst.msk [vmem:[%s802_s4 + $0x70] sm:$0xff] %vm21_vm0, %v393_v35  ;;  %v386_v43 = vadd.f32 %v354_v29, %v322_v41 }
 0x10f   :  { %338 = vst.msk [vmem:[%s801_s3 + $0x38] sm:$0xff] %vm21_vm0, %v322_v41  ;;  %346 = vst.msk [vmem:[%s801_s3 + $0x78] sm:$0xff] %vm21_vm0, %v330_v42  ;;  %v394_v44 = vadd.f32 %v362_v30, %v330_v42 }
 0x110   :  { %v320_v45 = vld [vmem:[#allocation2 + $0x28] sm:$0xff]  ;;  %399 = vst.msk [vmem:[%s802_s4 + $0x20] sm:$0xff] %vm21_vm0, %v383_v39  ;;  %407 = vst.msk [vmem:[%s802_s4 + $0x60] sm:$0xff] %vm21_vm0, %v391_v40 }
 0x111   :  { %v328_v46 = vld [vmem:[#allocation2 + $0x68] sm:$0xff]  ;;  %336 = vst.msk [vmem:[%s801_s3 + $0x28] sm:$0xff] %vm21_vm0, %v320_v45  ;;  %v384_v47 = vadd.f32 %v352_v33, %v320_v45  ;;  %402 = vst.msk [vmem:[%s802_s4 + $0x38] sm:$0xff] %vm21_vm0, %v386_v43 }
 0x112   :  { %344 = vst.msk [vmem:[%s801_s3 + $0x68] sm:$0xff] %vm21_vm0, %v328_v46  ;;  %v392_v48 = vadd.f32 %v360_v38, %v328_v46  ;;  %410 = vst.msk [vmem:[%s802_s4 + $0x78] sm:$0xff] %vm21_vm0, %v394_v44 }
 0x113   :  { %400 = vst.msk [vmem:[%s802_s4 + $0x28] sm:$0xff] %vm21_vm0, %v384_v47 }
 0x114   :  { %408 = vst.msk [vmem:[%s802_s4 + $0x68] sm:$0xff] %vm21_vm0, %v392_v48 }

// kernel: cgcl_forward.14
= control target key start
LH: loop header
LB: loop body
LE: loop exit
PB: predicated region body
PF: predicated region fallthrough
CT: control target
= control target key end

     0   :  { %s573_s12 = smov 0   ;;  %s575_s13 = smov 0   ;;  %s640_s0 = inlined_call_operand.vmem [shape: f32[16,32], index: 0, kind: input, shape index: {}]   ;;  %s641_s1 = inlined_call_operand.vmem [shape: bf16[16,32], index: 1, kind: input, shape index: {}]   ;;  %s642_s2 = inlined_call_operand.vmem [shape: bf16[48,32], index: 2, kind: input, shape index: {}]   ;;  %s643_s3 = inlined_call_operand.vmem [shape: f32[16,1], index: 3, kind: output, shape index: {}]  }
   0x1   :  { %s577_s14 = smov 0  }
   0x2 LB: > { %s25_s15 = sadd.s32 1, %s543_s13  ;;  %p456_p0 = scmp.ge.s32.totalorder %s547_s14, 1  ;;  %s547_s14 = sphi %s577_s14, %s13_s14   ;;  %s543_s13 = sphi %s575_s13, %s645_s13   ;;  %s539_s12 = sphi %s573_s12, %s644_s12  }
   0x3   : > { %p27_p1 = scmp.ge.s32.totalorder %s25_s15, 2  ;;  %p168_p2 = scmp.lt.s32.totalorder %s547_s14, 3 }
   0x5   : > { %s647_s15 = smov (%p27_p1, %s25_s15), 0  ;;  %p169_p3 = pnand %p456_p0, %p168_p2 }
   0x6   : > { %p199_p4 = scmp.lt.s32.totalorder (!%p169_p3), %s539_s12, 1  ;;  %vm224_vm0 = vcmask (!%p169_p3), 261120   ;;  %v510_v3 = vld [vmem:[%s642_s2] sm:$0xff] (!%p169_p3)   ;;  %v549_v4 = vmov (!%p169_p3), 0.0   ;;  %v511_v6 = vld [vmem:[%s642_s2 + $0x8] sm:$0xff] (!%p169_p3)   ;;  %v512_v8 = vld [vmem:[%s642_s2 + $0x10] sm:$0xff] (!%p169_p3)  }
   0x7   : > { %172 = sbr.rel (%p169_p3) target bundleno = 874 (0x36a), region = 32  ;;  %470 = vmatprep.subr.bf16.mxu0 (!%p169_p3), %v549_v4  ;;  %v272_v5 = vsel (!%p169_p3), %vm224_vm0, %v510_v3, 0  ;;  %v275_v7 = vsel (!%p169_p3), %vm224_vm0, %v511_v6, 0  ;;  %v278_v9 = vsel (!%p169_p3), %vm224_vm0, %v512_v8, 0  ;;  %vm550_vm1 = vmmov (!%p169_p3), 0  }
   0x8   : > { %471 = vmatpush3.bf16.xpose.msra.mxu0 (!%p169_p3), %v272_v5  ;;  %476 = vmatprep.mubr.msk.bf16.mxu0 (!%p169_p3), %vm550_vm1, %v549_v4  ;;  %vm233_vm2 = vcmask (!%p169_p3), 257024   ;;  %vm241_vm3 = vcmask (!%p169_p3), 7168   ;;  %v551_v20 = vmov (!%p169_p3), -inf   ;;  %vm321_vm4 = vcmask (!%p169_p3), 392192  }
   0x9   : > { %472 = vmatprep.subr.bf16.mxu0 (!%p169_p3), %v549_v4  ;;  %243 = vst.msk [vmem:[#allocation4] sm:$0xff] (!%p169_p3), %vm241_vm3, %v551_v20  ;;  %244 = vst.msk [vmem:[#allocation5] sm:$0xff] (!%p169_p3), %vm241_vm3, %v549_v4  ;;  %v552_v26 = vmov (!%p169_p3), 0  }
   0xa   : > { %508 = vset.pattern.permute.xlu1 (!%p169_p3), %v552_v26  ;;  %509 = vset.pattern.permute.xlu0 (!%p169_p3), %v552_v26 }
   0xe   : > { %s649_s12 = smov (!%p199_p4, %s539_s12), 1 }
   0xf   : > { %s457_s16 = sshll.u32 %s649_s12, 3  ;;  %s458_s26 = sshll.u32 %s649_s12, 2 }
  0x10   : > { %s202_s19 = scalar_lea.vmem %s640_s0, %s457_s16  ;;  %473 = vmatpush3.bf16.xpose.msra.mxu0 %v275_v7  ;;  %s206_s29 = scalar_lea.vmem %s641_s1, %s458_s26  ;;  %v320_v27 = vld [vmem:[#allocation4] sm:$0xff]  ;;  %v329_v40 = vld [vmem:[#allocation5] sm:$0xff] }
  0x11   : > { %v222_v0 = vld [vmem:[%s202_s19] sm:$0xff]  ;;  %474 = vmatprep.subr.bf16.mxu0 %v549_v4  ;;  %s216_s5 = scalar_lea.vmem %s643_s3, %s457_s16 }
  0x12   : > { %v223_v1 = vmul.f32 %v222_v0, %v222_v0  ;;  %v235_v12 = vld [vmem:[%s206_s29] sm:$0xf] }
  0x13   : > { %v236_v15 = vunpack.c.l.bf16 %v235_v12 }
  0x14   : > { %v225_v2 = vsel %vm224_vm0, %v223_v1, 0.0 }
  0x15   : > { %226 = vadd.xlane.f32.xlu0 %v225_v2 }
  0x18   : > { %475 = vmatpush3.bf16.xpose.msra.mxu0 %v278_v9 }
  0xa2   : > { %v227_v10 = vpop.xlane.xlu0 %226 }
  0xa3   : > { %v228_v11 = vmax.f32 %v227_v10, 1e-24 }
  0xa5   : > { %513 = vrsqrt.f32 %v228_v11 }
  0xaf   : > { %v514_v13 = vpop.eup %513 }
  0xb0   : > { %v230_v14 = vmul.f32 %v514_v13, %v222_v0 }
  0xb2   : > { %v231_v16 = vmul.f32 5.0, %v230_v14 }
  0xb4   : > { %v232_v17 = vpack.c.bf16 %v231_v16, %v231_v16  ;;  %v237_v18 = vmul.f32 %v236_v15, %v231_v16 }
  0xb6   : > { %234 = vst.msk [vmem:[#allocation2] sm:$0xf] %vm233_vm2, %v232_v17  ;;  %v238_v31 = vsel %vm224_vm0, %v237_v18, 0.0 }
  0xbd   : > { %v245_v19 = vld [vmem:[#allocation2] sm:$0xf] }
  0xbe   : > { %477 = vmatmul.mubr.msk.bf16.vlgmr.msra.gmra.mrb[0].mxu0 %vm224_vm0, %v245_v19 }
 0x191   : > { %v314_v21 = vpop.f32.mrb[0].mxu0 }
 0x192   : > { %v478_v22 = vpop.f32.mrb[1].mxu0  ;;  %v322_v23 = vsel %vm321_vm4, %v314_v21, -inf }
 0x193   : > { %323 = vmax.xlane.f32.xlu0 %v322_v23  ;;  %v317_v24 = vpop.f32.mrb[2].mxu0 }
 0x194   : > { %v479_v25 = vpop.f32.mrb[3].mxu0 }
 0x220   : > { %v324_v28 = vpop.xlane.xlu0 %323 }
 0x221   : > { %v325_v29 = vmax.f32 %v320_v27, %v324_v28 }
 0x223   : > { %v326_v30 = vsub.f32 %v320_v27, %v325_v29  ;;  %345 = vst.msk [vmem:[#allocation4] sm:$0xff] %vm241_vm3, %v325_v29  ;;  %333 = vperm.xlu1 %508, %v325_v29  }
 0x225   : > { %v327_v38 = vmul.f32 1.442695, %v326_v30 }
 0x22a   : > { %v350_v44 = vld [vmem:[#allocation4] sm:$0xff] }
 0x247   : > { %239 = vadd.xlane.f32.xlu1 %v238_v31 }
 0x2a2   : > { %v334_v32 = vpop.permute.xlu1 %333 }
 0x2a3   : > { %v336_v33 = vsub.f32 %v314_v21, %v334_v32 }
 0x2a5   : > { %v337_v34 = vmul.f32 1.442695, %v336_v33 }
 0x2a7   : > { %515 = vpow2.f32 %v337_v34 }
 0x2a8   : > { %517 = vpow2.f32 %v327_v38 }
 0x2b1   : > { %v516_v35 = vpop.eup %515 }
 0x2b2   : > { %v339_v36 = vsel %vm321_vm4, %v516_v35, 0.0  ;;  %v518_v39 = vpop.eup %517 }
 0x2b3   : > { %340 = vadd.xlane.f32.xlu0 %v339_v36  ;;  %v330_v42 = vmul.f32 %v518_v39, %v329_v40 }
 0x2d4   : > { %v240_v37 = vpop.xlane.xlu1 %239 }
 0x2d5   : > { %242 = vst.msk [vmem:[#allocation3] sm:$0xff] %vm241_vm3, %v240_v37 }
 0x2dc   : > { %v349_v41 = vld [vmem:[#allocation3] sm:$0xff] }
 0x2dd   : > { %v351_v46 = vsub.f32 %v349_v41, %v350_v44 }
 0x2df   : > { %v352_v47 = vmul.f32 1.442695, %v351_v46 }
 0x2e1   : > { %519 = vpow2.f32 %v352_v47 }
 0x2eb   : > { %v520_v49 = vpop.eup %519 }
 0x340   : > { %v341_v43 = vpop.xlane.xlu0 %340 }
 0x341   : > { %v342_v45 = vadd.f32 %v341_v43, %v330_v42 }
 0x343   : > { %344 = vst.msk [vmem:[#allocation5] sm:$0xff] %vm241_vm3, %v342_v45 }
 0x34a   : > { %v354_v48 = vld [vmem:[#allocation5] sm:$0xff] }
 0x34b   : > { %521 = vrcp.f32 %v354_v48 }
 0x355   : > { %v522_v50 = vpop.eup %521 }
 0x356   : > { %v356_v51 = vmul.f32 %v522_v50, %v520_v49 }
 0x358   : > { %v357_v52 = vadd.f32 1e-07, %v356_v51 }
 0x35a   : > { %523 = vlog2.f32 %v357_v52 }
 0x364   : > { %v524_v53 = vpop.eup %523 }
 0x365   : > { %v359_v54 = vmul.f32 0.6931472, %v524_v53 }
 0x367   : > { %v360_v55 = vsub.f32 0.0, %v359_v54 }
 0x369   : > { %361 = vst.msk [vmem:[%s216_s5] sm:$0xff] %vm241_vm3, %v360_v55 }
 0x36a PF: > { %s13_s14 = sadd.s32 1, %s547_s14   ;;  %s644_s12 = smov %s543_s13 }
 0x36b   : > { %p10_p5 = scmp.ge.s32.totalorder %s13_s14, 4   ;;  %s645_s13 = smov %s647_s15 }
 0x36d   :  { %12 = sbr.rel (!%p10_p5) target bundleno = 2 (0x2), region = 76 }

// kernel: cgcl_forward.16
= control target key start
LH: loop header
LB: loop body
LE: loop exit
PB: predicated region body
PF: predicated region fallthrough
CT: control target
= control target key end

     0   :  { %vm21_vm0 = vcmask 261120   ;;  %v202_v4 = vmov 0.0   ;;  %vm203_vm1 = vmmov 0   ;;  %vm30_vm2 = vcmask 257024   ;;  %s258_s0 = inlined_call_operand.vmem [shape: f32[8,32], index: 0, kind: input, shape index: {}]   ;;  %s259_s2 = inlined_call_operand.vmem [shape: bf16[48,32], index: 2, kind: input, shape index: {}]   ;;  %s260_s1 = inlined_call_operand.vmem [shape: bf16[8,32], index: 1, kind: input, shape index: {}]   ;;  %s261_s3 = inlined_call_operand.vmem [shape: f32[8,1], index: 3, kind: output, shape index: {}]  }
   0x1   :  { %v19_v0 = vld [vmem:[%s258_s0] sm:$0xff]  ;;  %171 = vmatprep.subr.bf16.mxu0 %v202_v4  ;;  %v188_v6 = vld [vmem:[%s259_s2 + $0x8] sm:$0xff]   ;;  %v189_v8 = vld [vmem:[%s259_s2 + $0x10] sm:$0xff]   ;;  %177 = vmatprep.mubr.msk.bf16.mxu0 %vm203_vm1, %v202_v4  ;;  %vm38_vm3 = vcmask 7168   ;;  %v204_v17 = vmov -inf   ;;  %vm118_vm4 = vcmask 392192  }
   0x2   :  { %v20_v1 = vmul.f32 %v19_v0, %v19_v0  ;;  %v187_v3 = vld [vmem:[%s259_s2] sm:$0xff]   ;;  %v72_v7 = vsel %vm21_vm0, %v188_v6, 0  ;;  %v75_v9 = vsel %vm21_vm0, %v189_v8, 0  ;;  %40 = vst.msk [vmem:[#allocation4] sm:$0xff] %vm38_vm3, %v204_v17  ;;  %41 = vst.msk [vmem:[#allocation5] sm:$0xff] %vm38_vm3, %v202_v4  ;;  %v205_v23 = vmov 0  }
   0x3   :  { %v69_v5 = vsel %vm21_vm0, %v187_v3, 0  ;;  %185 = vset.pattern.permute.xlu1 %v205_v23  ;;  %186 = vset.pattern.permute.xlu0 %v205_v23  ;;  %v32_v28 = vld [vmem:[%s260_s1] sm:$0xf] }
   0x4   :  { %v22_v2 = vsel %vm21_vm0, %v20_v1, 0.0  ;;  %172 = vmatpush3.bf16.xpose.msra.mxu0 %v69_v5  ;;  %v33_v29 = vunpack.c.l.bf16 %v32_v28 }
   0x5   :  { %23 = vadd.xlane.f32.xlu0 %v22_v2  ;;  %173 = vmatprep.subr.bf16.mxu0 %v202_v4 }
   0x9   :  { %v117_v24 = vld [vmem:[#allocation4] sm:$0xff]  ;;  %v126_v40 = vld [vmem:[#allocation5] sm:$0xff] }
   0xc   :  { %174 = vmatpush3.bf16.xpose.msra.mxu0 %v72_v7 }
   0xd   :  { %175 = vmatprep.subr.bf16.mxu0 %v202_v4 }
  0x14   :  { %176 = vmatpush3.bf16.xpose.msra.mxu0 %v75_v9 }
  0x92   :  { %v24_v10 = vpop.xlane.xlu0 %23 }
  0x93   :  { %v25_v11 = vmax.f32 %v24_v10, 1e-24 }
  0x95   :  { %190 = vrsqrt.f32 %v25_v11 }
  0x9f   :  { %v191_v12 = vpop.eup %190 }
  0xa0   :  { %v27_v13 = vmul.f32 %v191_v12, %v19_v0 }
  0xa2   :  { %v28_v14 = vmul.f32 5.0, %v27_v13 }
  0xa4   :  { %v29_v15 = vpack.c.bf16 %v28_v14, %v28_v14  ;;  %v34_v30 = vmul.f32 %v33_v29, %v28_v14 }
  0xa6   :  { %31 = vst.msk [vmem:[#allocation2] sm:$0xf] %vm30_vm2, %v29_v15  ;;  %v35_v31 = vsel %vm21_vm0, %v34_v30, 0.0 }
  0xad   :  { %v42_v16 = vld [vmem:[#allocation2] sm:$0xf] }
  0xae   :  { %178 = vmatmul.mubr.msk.bf16.vlgmr.msra.gmra.mrb[0].mxu0 %vm21_vm0, %v42_v16 }
 0x181   :  { %v111_v18 = vpop.f32.mrb[0].mxu0 }
 0x182   :  { %v179_v19 = vpop.f32.mrb[1].mxu0  ;;  %v119_v20 = vsel %vm118_vm4, %v111_v18, -inf }
 0x183   :  { %120 = vmax.xlane.f32.xlu0 %v119_v20  ;;  %v114_v21 = vpop.f32.mrb[2].mxu0 }
 0x184   :  { %v180_v22 = vpop.f32.mrb[3].mxu0 }
 0x210   :  { %v121_v25 = vpop.xlane.xlu0 %120 }
 0x211   :  { %v122_v26 = vmax.f32 %v117_v24, %v121_v25 }
 0x213   :  { %v123_v27 = vsub.f32 %v117_v24, %v122_v26  ;;  %142 = vst.msk [vmem:[#allocation4] sm:$0xff] %vm38_vm3, %v122_v26  ;;  %130 = vperm.xlu1 %185, %v122_v26  }
 0x215   :  { %v124_v38 = vmul.f32 1.442695, %v123_v27 }
 0x21a   :  { %v147_v44 = vld [vmem:[#allocation4] sm:$0xff] }
 0x237   :  { %36 = vadd.xlane.f32.xlu1 %v35_v31 }
 0x292   :  { %v131_v32 = vpop.permute.xlu1 %130 }
 0x293   :  { %v133_v33 = vsub.f32 %v111_v18, %v131_v32 }
 0x295   :  { %v134_v34 = vmul.f32 1.442695, %v133_v33 }
 0x297   :  { %192 = vpow2.f32 %v134_v34 }
 0x298   :  { %194 = vpow2.f32 %v124_v38 }
 0x2a1   :  { %v193_v35 = vpop.eup %192 }
 0x2a2   :  { %v136_v36 = vsel %vm118_vm4, %v193_v35, 0.0  ;;  %v195_v39 = vpop.eup %194 }
 0x2a3   :  { %137 = vadd.xlane.f32.xlu0 %v136_v36  ;;  %v127_v42 = vmul.f32 %v195_v39, %v126_v40 }
 0x2c4   :  { %v37_v37 = vpop.xlane.xlu1 %36 }
 0x2c5   :  { %39 = vst.msk [vmem:[#allocation3] sm:$0xff] %vm38_vm3, %v37_v37 }
 0x2cc   :  { %v146_v41 = vld [vmem:[#allocation3] sm:$0xff] }
 0x2cd   :  { %v148_v46 = vsub.f32 %v146_v41, %v147_v44 }
 0x2cf   :  { %v149_v47 = vmul.f32 1.442695, %v148_v46 }
 0x2d1   :  { %196 = vpow2.f32 %v149_v47 }
 0x2db   :  { %v197_v49 = vpop.eup %196 }
 0x330   :  { %v138_v43 = vpop.xlane.xlu0 %137 }
 0x331   :  { %v139_v45 = vadd.f32 %v138_v43, %v127_v42 }
 0x333   :  { %141 = vst.msk [vmem:[#allocation5] sm:$0xff] %vm38_vm3, %v139_v45 }
 0x33a   :  { %v151_v48 = vld [vmem:[#allocation5] sm:$0xff] }
 0x33b   :  { %198 = vrcp.f32 %v151_v48 }
 0x345   :  { %v199_v50 = vpop.eup %198 }
 0x346   :  { %v153_v51 = vmul.f32 %v199_v50, %v197_v49 }
 0x348   :  { %v154_v52 = vadd.f32 1e-07, %v153_v51 }
 0x34a   :  { %200 = vlog2.f32 %v154_v52 }
 0x354   :  { %v201_v53 = vpop.eup %200 }
 0x355   :  { %v156_v54 = vmul.f32 0.6931472, %v201_v53 }
 0x357   :  { %v157_v55 = vsub.f32 0.0, %v156_v54 }
 0x359   :  { %158 = vst.msk [vmem:[%s261_s3] sm:$0xff] %vm38_vm3, %v157_v55 }

// kernel: cgcl_forward.15
= control target key start
LH: loop header
LB: loop body
LE: loop exit
PB: predicated region body
PF: predicated region fallthrough
CT: control target
= control target key end

     0   :  { %s603_s12 = smov 0   ;;  %s605_s13 = smov 0   ;;  %s678_s0 = inlined_call_operand.vmem [shape: f32[16,32], index: 0, kind: input, shape index: {}]   ;;  %s679_s1 = inlined_call_operand.vmem [shape: bf16[16,32], index: 1, kind: input, shape index: {}]   ;;  %s680_s2 = inlined_call_operand.vmem [shape: bf16[80,32], index: 2, kind: input, shape index: {}]   ;;  %s681_s3 = inlined_call_operand.vmem [shape: f32[16,1], index: 3, kind: output, shape index: {}]  }
   0x1   :  { %s607_s14 = smov 0  }
   0x2 LB: > { %s25_s15 = sadd.s32 1, %s573_s13  ;;  %p476_p0 = scmp.ge.s32.totalorder %s577_s14, 1  ;;  %s577_s14 = sphi %s607_s14, %s13_s14   ;;  %s573_s13 = sphi %s605_s13, %s683_s13   ;;  %s569_s12 = sphi %s603_s12, %s682_s12  }
   0x3   : > { %p27_p1 = scmp.ge.s32.totalorder %s25_s15, 2  ;;  %p168_p2 = scmp.lt.s32.totalorder %s577_s14, 3 }
   0x5   : > { %s685_s15 = smov (%p27_p1, %s25_s15), 0  ;;  %p169_p3 = pnand %p476_p0, %p168_p2 }
   0x6   : > { %p199_p4 = scmp.lt.s32.totalorder (!%p169_p3), %s569_s12, 1  ;;  %vm224_vm0 = vcmask (!%p169_p3), 261120   ;;  %v538_v0 = vld [vmem:[%s680_s2] sm:$0xff] (!%p169_p3)   ;;  %v579_v1 = vmov (!%p169_p3), 0.0   ;;  %v539_v3 = vld [vmem:[%s680_s2 + $0x8] sm:$0xff] (!%p169_p3)   ;;  %v540_v8 = vld [vmem:[%s680_s2 + $0x10] sm:$0xff] (!%p169_p3)  }
   0x7   : > { %172 = sbr.rel (%p169_p3) target bundleno = 874 (0x36a), region = 32  ;;  %494 = vmatprep.subr.bf16.mxu0 (!%p169_p3), %v579_v1  ;;  %v286_v2 = vsel (!%p169_p3), %vm224_vm0, %v538_v0, 0  ;;  %v289_v6 = vsel (!%p169_p3), %vm224_vm0, %v539_v3, 0  ;;  %v292_v9 = vsel (!%p169_p3), %vm224_vm0, %v540_v8, 0  ;;  %v541_v10 = vld [vmem:[%s680_s2 + $0x18] sm:$0xff] (!%p169_p3)   ;;  %v542_v12 = vld [vmem:[%s680_s2 + $0x20] sm:$0xff] (!%p169_p3)  }
   0x8   : > { %495 = vmatpush3.bf16.xpose.msra.mxu0 (!%p169_p3), %v286_v2  ;;  %v295_v11 = vsel (!%p169_p3), %vm224_vm0, %v541_v10, 0  ;;  %v298_v13 = vsel (!%p169_p3), %vm224_vm0, %v542_v12, 0  ;;  %vm580_vm1 = vmmov (!%p169_p3), 0   ;;  %vm233_vm2 = vcmask (!%p169_p3), 257024  }
   0x9   : > { %496 = vmatprep.subr.bf16.mxu0 (!%p169_p3), %v579_v1  ;;  %504 = vmatprep.mubr.msk.bf16.mxu0 (!%p169_p3), %vm580_vm1, %v579_v1  ;;  %vm241_vm3 = vcmask (!%p169_p3), 7168   ;;  %v581_v24 = vmov (!%p169_p3), -inf   ;;  %vm341_vm4 = vcmask (!%p169_p3), 654336   ;;  %v582_v30 = vmov (!%p169_p3), 0  }
   0xa   : > { %243 = vst.msk [vmem:[#allocation4] sm:$0xff] (!%p169_p3), %vm241_vm3, %v581_v24  ;;  %244 = vst.msk [vmem:[#allocation5] sm:$0xff] (!%p169_p3), %vm241_vm3, %v579_v1  ;;  %536 = vset.pattern.permute.xlu1 (!%p169_p3), %v582_v30  ;;  %537 = vset.pattern.permute.xlu0 (!%p169_p3), %v582_v30 }
   0xe   : > { %s687_s12 = smov (!%p199_p4, %s569_s12), 1 }
   0xf   : > { %s477_s18 = sshll.u32 %s687_s12, 3  ;;  %s478_s30 = sshll.u32 %s687_s12, 2 }
  0x10   : > { %s202_s23 = scalar_lea.vmem %s678_s0, %s477_s18  ;;  %497 = vmatpush3.bf16.xpose.msra.mxu0 %v289_v6  ;;  %s206_s6 = scalar_lea.vmem %s679_s1, %s478_s30 }
  0x11   : > { %v222_v4 = vld [vmem:[%s202_s23] sm:$0xff]  ;;  %498 = vmatprep.subr.bf16.mxu0 %v579_v1  ;;  %v349_v44 = vld [vmem:[#allocation5] sm:$0xff]  ;;  %s216_s9 = scalar_lea.vmem %s681_s3, %s477_s18 }
  0x12   : > { %v223_v5 = vmul.f32 %v222_v4, %v222_v4  ;;  %v235_v16 = vld [vmem:[%s206_s6] sm:$0xf]  ;;  %v340_v31 = vld [vmem:[#allocation4] sm:$0xff] }
  0x13   : > { %v236_v19 = vunpack.c.l.bf16 %v235_v16 }
  0x14   : > { %v225_v7 = vsel %vm224_vm0, %v223_v5, 0.0 }
  0x15   : > { %226 = vadd.xlane.f32.xlu0 %v225_v7 }
  0x18   : > { %499 = vmatpush3.bf16.xpose.msra.mxu0 %v292_v9 }
  0x19   : > { %500 = vmatprep.subr.bf16.mxu0 %v579_v1 }
  0x20   : > { %501 = vmatpush3.bf16.xpose.msra.mxu0 %v295_v11 }
  0x21   : > { %502 = vmatprep.subr.bf16.mxu0 %v579_v1 }
  0x28   : > { %503 = vmatpush3.bf16.xpose.msra.mxu0 %v298_v13 }
  0xa2   : > { %v227_v14 = vpop.xlane.xlu0 %226 }
  0xa3   : > { %v228_v15 = vmax.f32 %v227_v14, 1e-24 }
  0xa5   : > { %543 = vrsqrt.f32 %v228_v15 }
  0xaf   : > { %v544_v17 = vpop.eup %543 }
  0xb0   : > { %v230_v18 = vmul.f32 %v544_v17, %v222_v4 }
  0xb2   : > { %v231_v20 = vmul.f32 5.0, %v230_v18 }
  0xb4   : > { %v232_v21 = vpack.c.bf16 %v231_v20, %v231_v20  ;;  %v237_v22 = vmul.f32 %v236_v19, %v231_v20 }
  0xb6   : > { %234 = vst.msk [vmem:[#allocation2] sm:$0xf] %vm233_vm2, %v232_v21  ;;  %v238_v35 = vsel %vm224_vm0, %v237_v22, 0.0 }
  0xbd   : > { %v245_v23 = vld [vmem:[#allocation2] sm:$0xf] }
  0xbe   : > { %505 = vmatmul.mubr.msk.bf16.vlgmr.msra.gmra.mrb[0].mxu0 %vm224_vm0, %v245_v23 }
 0x191   : > { %v334_v25 = vpop.f32.mrb[0].mxu0 }
 0x192   : > { %v506_v26 = vpop.f32.mrb[1].mxu0  ;;  %v342_v27 = vsel %vm341_vm4, %v334_v25, -inf }
 0x193   : > { %343 = vmax.xlane.f32.xlu0 %v342_v27  ;;  %v337_v28 = vpop.f32.mrb[2].mxu0 }
 0x194   : > { %v507_v29 = vpop.f32.mrb[3].mxu0 }
 0x220   : > { %v344_v32 = vpop.xlane.xlu0 %343 }
 0x221   : > { %v345_v33 = vmax.f32 %v340_v31, %v344_v32 }
 0x223   : > { %v346_v34 = vsub.f32 %v340_v31, %v345_v33  ;;  %365 = vst.msk [vmem:[#allocation4] sm:$0xff] %vm241_vm3, %v345_v33  ;;  %353 = vperm.xlu1 %536, %v345_v33  }
 0x225   : > { %v347_v42 = vmul.f32 1.442695, %v346_v34 }
 0x22a   : > { %v370_v48 = vld [vmem:[#allocation4] sm:$0xff] }
 0x247   : > { %239 = vadd.xlane.f32.xlu1 %v238_v35 }
 0x2a2   : > { %v354_v36 = vpop.permute.xlu1 %353 }
 0x2a3   : > { %v356_v37 = vsub.f32 %v334_v25, %v354_v36 }
 0x2a5   : > { %v357_v38 = vmul.f32 1.442695, %v356_v37 }
 0x2a7   : > { %545 = vpow2.f32 %v357_v38 }
 0x2a8   : > { %547 = vpow2.f32 %v347_v42 }
 0x2b1   : > { %v546_v39 = vpop.eup %545 }
 0x2b2   : > { %v359_v40 = vsel %vm341_vm4, %v546_v39, 0.0  ;;  %v548_v43 = vpop.eup %547 }
 0x2b3   : > { %360 = vadd.xlane.f32.xlu0 %v359_v40  ;;  %v350_v46 = vmul.f32 %v548_v43, %v349_v44 }
 0x2d4   : > { %v240_v41 = vpop.xlane.xlu1 %239 }
 0x2d5   : > { %242 = vst.msk [vmem:[#allocation3] sm:$0xff] %vm241_vm3, %v240_v41 }
 0x2dc   : > { %v369_v45 = vld [vmem:[#allocation3] sm:$0xff] }
 0x2dd   : > { %v371_v50 = vsub.f32 %v369_v45, %v370_v48 }
 0x2df   : > { %v372_v51 = vmul.f32 1.442695, %v371_v50 }
 0x2e1   : > { %549 = vpow2.f32 %v372_v51 }
 0x2eb   : > { %v550_v53 = vpop.eup %549 }
 0x340   : > { %v361_v47 = vpop.xlane.xlu0 %360 }
 0x341   : > { %v362_v49 = vadd.f32 %v361_v47, %v350_v46 }
 0x343   : > { %364 = vst.msk [vmem:[#allocation5] sm:$0xff] %vm241_vm3, %v362_v49 }
 0x34a   : > { %v374_v52 = vld [vmem:[#allocation5] sm:$0xff] }
 0x34b   : > { %551 = vrcp.f32 %v374_v52 }
 0x355   : > { %v552_v54 = vpop.eup %551 }
 0x356   : > { %v376_v55 = vmul.f32 %v552_v54, %v550_v53 }
 0x358   : > { %v377_v56 = vadd.f32 1e-07, %v376_v55 }
 0x35a   : > { %553 = vlog2.f32 %v377_v56 }
 0x364   : > { %v554_v57 = vpop.eup %553 }
 0x365   : > { %v379_v58 = vmul.f32 0.6931472, %v554_v57 }
 0x367   : > { %v380_v59 = vsub.f32 0.0, %v379_v58 }
 0x369   : > { %381 = vst.msk [vmem:[%s216_s9] sm:$0xff] %vm241_vm3, %v380_v59 }
 0x36a PF: > { %s13_s14 = sadd.s32 1, %s577_s14   ;;  %s682_s12 = smov %s573_s13 }
 0x36b   : > { %p10_p5 = scmp.ge.s32.totalorder %s13_s14, 4   ;;  %s683_s13 = smov %s685_s15 }
 0x36d   :  { %12 = sbr.rel (!%p10_p5) target bundleno = 2 (0x2), region = 76 }

</bundles_post_ra>
